<compile_context>
chip_gen: v5e
topology: v5e:2x2
jax: 0.10.0
libtpu: 0.0.40
codegen_flags: <defaults>
</compile_context>

<pallas_src>
import functools

import jax
import jax.numpy as jnp
from jax.experimental import pallas as pl
from jax.experimental.pallas import tpu as pltpu

NB_LAYERS = 3
NB_NODES = 64
NB_INPUTS = 2
NB_OUTPUTS = 2


def _mlp_kernel(x_ref,
                w0_ref, b0_ref,
                w1_ref, b1_ref,
                w2_ref, b2_ref,
                w3_ref, b3_ref,
                w4_ref, b4_ref,
                o_ref,
                *, sub_n, num_chunks):
    # Hoist all weights/biases once per grid step (they are tiny).
    w0 = w0_ref[...]; b0 = b0_ref[...]
    w1 = w1_ref[...]; b1 = b1_ref[...]
    w2 = w2_ref[...]; b2 = b2_ref[...]
    w3 = w3_ref[...]; b3 = b3_ref[...]
    w4 = w4_ref[...]; b4 = b4_ref[...]

    # Columns of the first-layer weight, used as VPU broadcast operands.
    w0_c0 = w0[:, 0:1]   # (NB_NODES, 1)
    w0_c1 = w0[:, 1:2]   # (NB_NODES, 1)

    # Static unrolled sub-chunk loop: lets the scheduler co-issue the EUP tanh
    # of one chunk with the MXU matmul of the next (different VLIW slots).
    for c in range(num_chunks):
        lo = c * sub_n
        xc = x_ref[:, lo:lo + sub_n]                  # (2, sub_n), lane-dense

        # Layer 0: K=2 contraction on the VPU (two FMAs), no MXU pass.
        h = jnp.tanh(w0_c0 * xc[0:1, :] + w0_c1 * xc[1:2, :] + b0)

        # Hidden 64x64 layers on the MXU, tanh on the EUP.
        h = jnp.tanh(jnp.dot(w1, h, preferred_element_type=jnp.float32) + b1)
        h = jnp.tanh(jnp.dot(w2, h, preferred_element_type=jnp.float32) + b2)
        h = jnp.tanh(jnp.dot(w3, h, preferred_element_type=jnp.float32) + b3)

        # Output layer (no activation); result is (2, sub_n) — lane-dense
        # slab, stored with full unmasked vector stores.
        out = jnp.dot(w4, h, preferred_element_type=jnp.float32) + b4
        o_ref[:, lo:lo + sub_n] = out.astype(o_ref.dtype)


def pinn_mlp_forward(x, params, *, tile_n=512, sub_n=256):
    """x: [N, NB_INPUTS] float32 -> [N, NB_OUTPUTS] float32."""
    n, d_in = x.shape
    assert d_in == NB_INPUTS
    assert tile_n % 128 == 0 and tile_n % sub_n == 0

    (w0, b0), (w1, b1), (w2, b2), (w3, b3), (w4, b4) = params

    # Feature-major layout + pad N up to a tile multiple in the wrapper
    # (padded rows are garbage and get sliced off — pure MLP, no interaction).
    num_tiles = pl.cdiv(n, tile_n)
    padded_n = num_tiles * tile_n
    x_t = x.T                                         # (NB_INPUTS, n)
    if padded_n != n:
        x_t = jnp.pad(x_t, ((0, 0), (0, padded_n - n)))

    grid = (num_tiles,)
    num_chunks = tile_n // sub_n
    kernel = functools.partial(_mlp_kernel, sub_n=sub_n, num_chunks=num_chunks)

    def full_block(arr):
        # Weights / biases are tiny: pass the whole array to every grid step.
        return pl.BlockSpec(arr.shape, lambda i: (0, 0))

    in_specs = [
        pl.BlockSpec((NB_INPUTS, tile_n), lambda i: (0, i)),   # x tile
        full_block(w0), full_block(b0),
        full_block(w1), full_block(b1),
        full_block(w2), full_block(b2),
        full_block(w3), full_block(b3),
        full_block(w4), full_block(b4),
    ]
    out_spec = pl.BlockSpec((NB_OUTPUTS, tile_n), lambda i: (0, i))

    # Advisory cost hint for XLA scheduling of the surrounding PINN graph.
    flops = 2 * n * (NB_INPUTS * NB_NODES
                     + NB_LAYERS * NB_NODES * NB_NODES
                     + NB_NODES * NB_OUTPUTS)
    transcendentals = (NB_LAYERS + 1) * NB_NODES * n
    weight_bytes = sum(int(a.size) * a.dtype.itemsize
                       for pair in params for a in pair)
    bytes_accessed = 4 * n * (NB_INPUTS + NB_OUTPUTS) + weight_bytes

    out_t = pl.pallas_call(
        kernel,
        out_shape=jax.ShapeDtypeStruct((NB_OUTPUTS, padded_n), jnp.float32),
        grid_spec=pltpu.PrefetchScalarGridSpec(
            num_scalar_prefetch=0,
            grid=grid,
            in_specs=in_specs,
            out_specs=out_spec,
        ),
        compiler_params=pltpu.CompilerParams(
            dimension_semantics=("parallel",)),
        cost_estimate=pl.CostEstimate(
            flops=flops,
            transcendentals=transcendentals,
            bytes_accessed=bytes_accessed),
    )(x_t, w0, b0, w1, b1, w2, b2, w3, b3, w4, b4)

    return out_t[:, :n].T


def init_params(key):
    """PyTorch-Linear-style init (uniform +-1/sqrt(fan_in)).

    Weights are kept in the native torch (out_features, in_features) layout;
    biases are stored as (out_features, 1) so they broadcast over the lane
    (batch) axis inside the kernel.
    """
    dims = [(NB_INPUTS, NB_NODES)]
    dims += [(NB_NODES, NB_NODES)] * NB_LAYERS
    dims += [(NB_NODES, NB_OUTPUTS)]

    params = []
    for (fan_in, fan_out) in dims:
        key, kw, kb = jax.random.split(key, 3)
        bound = 1.0 / jnp.sqrt(float(fan_in))
        w = jax.random.uniform(kw, (fan_out, fan_in), jnp.float32,
                               minval=-bound, maxval=bound)
        b = jax.random.uniform(kb, (fan_out, 1), jnp.float32,
                               minval=-bound, maxval=bound)
        params.append((w, b))
    return params


def reference_forward(x, params):
    h = x
    for i, (w, b) in enumerate(params):
        h = h @ w.T + b.T
        if i < len(params) - 1:
            h = jnp.tanh(h)
    return h


if __name__ == "__main__":
    key = jax.random.PRNGKey(0)
    kx, kp = jax.random.split(key)

    N = 1000  # arbitrary number of collocation points (not a tile multiple)
    x = jax.random.normal(kx, (N, NB_INPUTS), jnp.float32)
    params = init_params(kp)

    out = pinn_mlp_forward(x, params, tile_n=512, sub_n=256)
    out = jax.block_until_ready(out)

    ref = reference_forward(x, params)
    assert out.shape == (N, NB_OUTPUTS)
    err = jnp.max(jnp.abs(out - ref))
    assert jnp.allclose(out, ref, atol=1e-5, rtol=1e-5), f"max abs err {err}"

    print("KERNEL_OK")
</pallas_src>

<mosaic_0001>
module attributes {stable_mosaic.version = 11 : i64} {
  func.func @_mlp_kernel(%arg0: i32, %arg1: memref<2x512xf32, #tpu.memory_space<vmem>>, %arg2: memref<64x2xf32, #tpu.memory_space<vmem>>, %arg3: memref<64x1xf32, #tpu.memory_space<vmem>>, %arg4: memref<64x64xf32, #tpu.memory_space<vmem>>, %arg5: memref<64x1xf32, #tpu.memory_space<vmem>>, %arg6: memref<64x64xf32, #tpu.memory_space<vmem>>, %arg7: memref<64x1xf32, #tpu.memory_space<vmem>>, %arg8: memref<64x64xf32, #tpu.memory_space<vmem>>, %arg9: memref<64x1xf32, #tpu.memory_space<vmem>>, %arg10: memref<2x64xf32, #tpu.memory_space<vmem>>, %arg11: memref<2x1xf32, #tpu.memory_space<vmem>>, %arg12: memref<2x512xf32, #tpu.memory_space<vmem>>) attributes {dimension_semantics = [#tpu.dimension_semantics<parallel>], iteration_bounds = array<i64: 2>, scalar_prefetch = 0 : i64, scratch_operands = 0 : i64, tpu.core_type = #tpu.core_type<tc>, window_params = [{transform_indices = @transform_0, window_bounds = array<i64: 2, 512>}, {pipeline_mode = #tpu.pipeline_mode<synchronous>, transform_indices = @transform_1, window_bounds = array<i64: 64, 2>}, {pipeline_mode = #tpu.pipeline_mode<synchronous>, transform_indices = @transform_2, window_bounds = array<i64: 64, 1>}, {pipeline_mode = #tpu.pipeline_mode<synchronous>, transform_indices = @transform_3, window_bounds = array<i64: 64, 64>}, {pipeline_mode = #tpu.pipeline_mode<synchronous>, transform_indices = @transform_4, window_bounds = array<i64: 64, 1>}, {pipeline_mode = #tpu.pipeline_mode<synchronous>, transform_indices = @transform_5, window_bounds = array<i64: 64, 64>}, {pipeline_mode = #tpu.pipeline_mode<synchronous>, transform_indices = @transform_6, window_bounds = array<i64: 64, 1>}, {pipeline_mode = #tpu.pipeline_mode<synchronous>, transform_indices = @transform_7, window_bounds = array<i64: 64, 64>}, {pipeline_mode = #tpu.pipeline_mode<synchronous>, transform_indices = @transform_8, window_bounds = array<i64: 64, 1>}, {pipeline_mode = #tpu.pipeline_mode<synchronous>, transform_indices = @transform_9, window_bounds = array<i64: 2, 64>}, {pipeline_mode = #tpu.pipeline_mode<synchronous>, transform_indices = @transform_10, window_bounds = array<i64: 2, 1>}, {transform_indices = @transform_11, window_bounds = array<i64: 2, 512>}]} {
    %c0 = arith.constant 0 : index
    %c0_0 = arith.constant 0 : index
    %0 = vector.load %arg2[%c0, %c0_0] : memref<64x2xf32, #tpu.memory_space<vmem>>, vector<64x2xf32>
    %c0_1 = arith.constant 0 : index
    %c0_2 = arith.constant 0 : index
    %1 = vector.load %arg3[%c0_1, %c0_2] : memref<64x1xf32, #tpu.memory_space<vmem>>, vector<64x1xf32>
    %c0_3 = arith.constant 0 : index
    %c0_4 = arith.constant 0 : index
    %2 = vector.load %arg4[%c0_3, %c0_4] : memref<64x64xf32, #tpu.memory_space<vmem>>, vector<64x64xf32>
    %c0_5 = arith.constant 0 : index
    %c0_6 = arith.constant 0 : index
    %3 = vector.load %arg5[%c0_5, %c0_6] : memref<64x1xf32, #tpu.memory_space<vmem>>, vector<64x1xf32>
    %c0_7 = arith.constant 0 : index
    %c0_8 = arith.constant 0 : index
    %4 = vector.load %arg6[%c0_7, %c0_8] : memref<64x64xf32, #tpu.memory_space<vmem>>, vector<64x64xf32>
    %c0_9 = arith.constant 0 : index
    %c0_10 = arith.constant 0 : index
    %5 = vector.load %arg7[%c0_9, %c0_10] : memref<64x1xf32, #tpu.memory_space<vmem>>, vector<64x1xf32>
    %c0_11 = arith.constant 0 : index
    %c0_12 = arith.constant 0 : index
    %6 = vector.load %arg8[%c0_11, %c0_12] : memref<64x64xf32, #tpu.memory_space<vmem>>, vector<64x64xf32>
    %c0_13 = arith.constant 0 : index
    %c0_14 = arith.constant 0 : index
    %7 = vector.load %arg9[%c0_13, %c0_14] : memref<64x1xf32, #tpu.memory_space<vmem>>, vector<64x1xf32>
    %c0_15 = arith.constant 0 : index
    %c0_16 = arith.constant 0 : index
    %8 = vector.load %arg10[%c0_15, %c0_16] : memref<2x64xf32, #tpu.memory_space<vmem>>, vector<2x64xf32>
    %c0_17 = arith.constant 0 : index
    %c0_18 = arith.constant 0 : index
    %9 = vector.load %arg11[%c0_17, %c0_18] : memref<2x1xf32, #tpu.memory_space<vmem>>, vector<2x1xf32>
    %10 = vector.extract_strided_slice %0 {offsets = [0, 0], sizes = [64, 1], strides = [1, 1]} : vector<64x2xf32> to vector<64x1xf32>
    %11 = vector.extract_strided_slice %0 {offsets = [0, 1], sizes = [64, 1], strides = [1, 1]} : vector<64x2xf32> to vector<64x1xf32>
    %c0_19 = arith.constant 0 : index
    %c0_20 = arith.constant 0 : index
    %12 = vector.load %arg1[%c0_19, %c0_20] : memref<2x512xf32, #tpu.memory_space<vmem>>, vector<2x256xf32>
    %13 = vector.extract_strided_slice %12 {offsets = [0, 0], sizes = [1, 256], strides = [1, 1]} : vector<2x256xf32> to vector<1x256xf32>
    %14 = vector.broadcast %10 : vector<64x1xf32> to vector<64x256xf32>
    %15 = vector.broadcast %13 : vector<1x256xf32> to vector<64x256xf32>
    %16 = arith.mulf %14, %15 : vector<64x256xf32>
    %17 = vector.extract_strided_slice %12 {offsets = [1, 0], sizes = [1, 256], strides = [1, 1]} : vector<2x256xf32> to vector<1x256xf32>
    %18 = vector.broadcast %11 : vector<64x1xf32> to vector<64x256xf32>
    %19 = vector.broadcast %17 : vector<1x256xf32> to vector<64x256xf32>
    %20 = arith.mulf %18, %19 : vector<64x256xf32>
    %21 = arith.addf %16, %20 : vector<64x256xf32>
    %22 = vector.broadcast %1 : vector<64x1xf32> to vector<64x256xf32>
    %23 = arith.addf %21, %22 : vector<64x256xf32>
    %24 = math.tanh %23 : vector<64x256xf32>
    %cst = arith.constant dense<0.000000e+00> : vector<64x256xf32>
    %25 = tpu.matmul %2, %24, %cst {dimension_numbers = #tpu.dot_dimension_numbers<[1], [0], [0], [1], [0, 0, 1, 1], [], []>} : vector<64x64xf32>, vector<64x256xf32>, vector<64x256xf32> -> vector<64x256xf32>
    %26 = vector.broadcast %3 : vector<64x1xf32> to vector<64x256xf32>
    %27 = arith.addf %25, %26 : vector<64x256xf32>
    %28 = math.tanh %27 : vector<64x256xf32>
    %cst_21 = arith.constant dense<0.000000e+00> : vector<64x256xf32>
    %29 = tpu.matmul %4, %28, %cst_21 {dimension_numbers = #tpu.dot_dimension_numbers<[1], [0], [0], [1], [0, 0, 1, 1], [], []>} : vector<64x64xf32>, vector<64x256xf32>, vector<64x256xf32> -> vector<64x256xf32>
    %30 = vector.broadcast %5 : vector<64x1xf32> to vector<64x256xf32>
    %31 = arith.addf %29, %30 : vector<64x256xf32>
    %32 = math.tanh %31 : vector<64x256xf32>
    %cst_22 = arith.constant dense<0.000000e+00> : vector<64x256xf32>
    %33 = tpu.matmul %6, %32, %cst_22 {dimension_numbers = #tpu.dot_dimension_numbers<[1], [0], [0], [1], [0, 0, 1, 1], [], []>} : vector<64x64xf32>, vector<64x256xf32>, vector<64x256xf32> -> vector<64x256xf32>
    %34 = vector.broadcast %7 : vector<64x1xf32> to vector<64x256xf32>
    %35 = arith.addf %33, %34 : vector<64x256xf32>
    %36 = math.tanh %35 : vector<64x256xf32>
    %cst_23 = arith.constant dense<0.000000e+00> : vector<2x256xf32>
    %37 = tpu.matmul %8, %36, %cst_23 {dimension_numbers = #tpu.dot_dimension_numbers<[1], [0], [0], [1], [0, 0, 1, 1], [], []>} : vector<2x64xf32>, vector<64x256xf32>, vector<2x256xf32> -> vector<2x256xf32>
    %38 = vector.broadcast %9 : vector<2x1xf32> to vector<2x256xf32>
    %39 = arith.addf %37, %38 : vector<2x256xf32>
    %c0_24 = arith.constant 0 : index
    %c0_25 = arith.constant 0 : index
    %40 = vector.load %arg12[%c0_24, %c0_25] : memref<2x512xf32, #tpu.memory_space<vmem>>, vector<2x256xf32>
    tpu.vector_store %arg12[%c0_24, %c0_25], %39 {strides = array<i32>} : memref<2x512xf32, #tpu.memory_space<vmem>>, vector<2x256xf32>,
    %c0_26 = arith.constant 0 : index
    %c256 = arith.constant 256 : index
    %41 = vector.load %arg1[%c0_26, %c256] : memref<2x512xf32, #tpu.memory_space<vmem>>, vector<2x256xf32>
    %42 = vector.extract_strided_slice %41 {offsets = [0, 0], sizes = [1, 256], strides = [1, 1]} : vector<2x256xf32> to vector<1x256xf32>
    %43 = vector.broadcast %10 : vector<64x1xf32> to vector<64x256xf32>
    %44 = vector.broadcast %42 : vector<1x256xf32> to vector<64x256xf32>
    %45 = arith.mulf %43, %44 : vector<64x256xf32>
    %46 = vector.extract_strided_slice %41 {offsets = [1, 0], sizes = [1, 256], strides = [1, 1]} : vector<2x256xf32> to vector<1x256xf32>
    %47 = vector.broadcast %11 : vector<64x1xf32> to vector<64x256xf32>
    %48 = vector.broadcast %46 : vector<1x256xf32> to vector<64x256xf32>
    %49 = arith.mulf %47, %48 : vector<64x256xf32>
    %50 = arith.addf %45, %49 : vector<64x256xf32>
    %51 = vector.broadcast %1 : vector<64x1xf32> to vector<64x256xf32>
    %52 = arith.addf %50, %51 : vector<64x256xf32>
    %53 = math.tanh %52 : vector<64x256xf32>
    %cst_27 = arith.constant dense<0.000000e+00> : vector<64x256xf32>
    %54 = tpu.matmul %2, %53, %cst_27 {dimension_numbers = #tpu.dot_dimension_numbers<[1], [0], [0], [1], [0, 0, 1, 1], [], []>} : vector<64x64xf32>, vector<64x256xf32>, vector<64x256xf32> -> vector<64x256xf32>
    %55 = vector.broadcast %3 : vector<64x1xf32> to vector<64x256xf32>
    %56 = arith.addf %54, %55 : vector<64x256xf32>
    %57 = math.tanh %56 : vector<64x256xf32>
    %cst_28 = arith.constant dense<0.000000e+00> : vector<64x256xf32>
    %58 = tpu.matmul %4, %57, %cst_28 {dimension_numbers = #tpu.dot_dimension_numbers<[1], [0], [0], [1], [0, 0, 1, 1], [], []>} : vector<64x64xf32>, vector<64x256xf32>, vector<64x256xf32> -> vector<64x256xf32>
    %59 = vector.broadcast %5 : vector<64x1xf32> to vector<64x256xf32>
    %60 = arith.addf %58, %59 : vector<64x256xf32>
    %61 = math.tanh %60 : vector<64x256xf32>
    %cst_29 = arith.constant dense<0.000000e+00> : vector<64x256xf32>
    %62 = tpu.matmul %6, %61, %cst_29 {dimension_numbers = #tpu.dot_dimension_numbers<[1], [0], [0], [1], [0, 0, 1, 1], [], []>} : vector<64x64xf32>, vector<64x256xf32>, vector<64x256xf32> -> vector<64x256xf32>
    %63 = vector.broadcast %7 : vector<64x1xf32> to vector<64x256xf32>
    %64 = arith.addf %62, %63 : vector<64x256xf32>
    %65 = math.tanh %64 : vector<64x256xf32>
    %cst_30 = arith.constant dense<0.000000e+00> : vector<2x256xf32>
    %66 = tpu.matmul %8, %65, %cst_30 {dimension_numbers = #tpu.dot_dimension_numbers<[1], [0], [0], [1], [0, 0, 1, 1], [], []>} : vector<2x64xf32>, vector<64x256xf32>, vector<2x256xf32> -> vector<2x256xf32>
    %67 = vector.broadcast %9 : vector<2x1xf32> to vector<2x256xf32>
    %68 = arith.addf %66, %67 : vector<2x256xf32>
    %c0_31 = arith.constant 0 : index
    %c256_32 = arith.constant 256 : index
    %69 = vector.load %arg12[%c0_31, %c256_32] : memref<2x512xf32, #tpu.memory_space<vmem>>, vector<2x256xf32>
    tpu.vector_store %arg12[%c0_31, %c256_32], %68 {strides = array<i32>} : memref<2x512xf32, #tpu.memory_space<vmem>>, vector<2x256xf32>,
    return
  }
  func.func @transform_0(%arg0: i32) -> (i32, i32) {
    %c0_i32 = arith.constant 0 : i32
    %c0_i32_0 = arith.constant 0 : i32
    return %c0_i32, %arg0 : i32, i32
  }
  func.func @transform_1(%arg0: i32) -> (i32, i32) {
    %c0_i32 = arith.constant 0 : i32
    %c0_i32_0 = arith.constant 0 : i32
    %c0_i32_1 = arith.constant 0 : i32
    return %c0_i32, %c0_i32_0 : i32, i32
  }
  func.func @transform_2(%arg0: i32) -> (i32, i32) {
    %c0_i32 = arith.constant 0 : i32
    %c0_i32_0 = arith.constant 0 : i32
    %c0_i32_1 = arith.constant 0 : i32
    return %c0_i32, %c0_i32_0 : i32, i32
  }
  func.func @transform_3(%arg0: i32) -> (i32, i32) {
    %c0_i32 = arith.constant 0 : i32
    %c0_i32_0 = arith.constant 0 : i32
    %c0_i32_1 = arith.constant 0 : i32
    return %c0_i32, %c0_i32_0 : i32, i32
  }
  func.func @transform_4(%arg0: i32) -> (i32, i32) {
    %c0_i32 = arith.constant 0 : i32
    %c0_i32_0 = arith.constant 0 : i32
    %c0_i32_1 = arith.constant 0 : i32
    return %c0_i32, %c0_i32_0 : i32, i32
  }
  func.func @transform_5(%arg0: i32) -> (i32, i32) {
    %c0_i32 = arith.constant 0 : i32
    %c0_i32_0 = arith.constant 0 : i32
    %c0_i32_1 = arith.constant 0 : i32
    return %c0_i32, %c0_i32_0 : i32, i32
  }
  func.func @transform_6(%arg0: i32) -> (i32, i32) {
    %c0_i32 = arith.constant 0 : i32
    %c0_i32_0 = arith.constant 0 : i32
    %c0_i32_1 = arith.constant 0 : i32
    return %c0_i32, %c0_i32_0 : i32, i32
  }
  func.func @transform_7(%arg0: i32) -> (i32, i32) {
    %c0_i32 = arith.constant 0 : i32
    %c0_i32_0 = arith.constant 0 : i32
    %c0_i32_1 = arith.constant 0 : i32
    return %c0_i32, %c0_i32_0 : i32, i32
  }
  func.func @transform_8(%arg0: i32) -> (i32, i32) {
    %c0_i32 = arith.constant 0 : i32
    %c0_i32_0 = arith.constant 0 : i32
    %c0_i32_1 = arith.constant 0 : i32
    return %c0_i32, %c0_i32_0 : i32, i32
  }
  func.func @transform_9(%arg0: i32) -> (i32, i32) {
    %c0_i32 = arith.constant 0 : i32
    %c0_i32_0 = arith.constant 0 : i32
    %c0_i32_1 = arith.constant 0 : i32
    return %c0_i32, %c0_i32_0 : i32, i32
  }
  func.func @transform_10(%arg0: i32) -> (i32, i32) {
    %c0_i32 = arith.constant 0 : i32
    %c0_i32_0 = arith.constant 0 : i32
    %c0_i32_1 = arith.constant 0 : i32
    return %c0_i32, %c0_i32_0 : i32, i32
  }
  func.func @transform_11(%arg0: i32) -> (i32, i32) {
    %c0_i32 = arith.constant 0 : i32
    %c0_i32_0 = arith.constant 0 : i32
    return %c0_i32, %arg0 : i32, i32
  }
}

</mosaic_0001>

<bundles_post_ra>
// kernel: tpu_custom_call.1
= control target key start
LH: loop header
LB: loop body
LE: loop exit
PB: predicated region body
PF: predicated region fallthrough
CT: control target
= control target key end

     0   :  { %s3196_s0 = inlined_call_operand.vmem [shape: f32[2,1024], index: 0, kind: input, shape index: {}]   ;;  %s3197_s1 = inlined_call_operand.vmem [shape: f32[64,2], index: 1, kind: input, shape index: {}]   ;;  %s3198_s2 = inlined_call_operand.vmem [shape: f32[64,1], index: 2, kind: input, shape index: {}]   ;;  %s3199_s3 = inlined_call_operand.vmem [shape: f32[64,64], index: 3, kind: input, shape index: {}]   ;;  %s3200_s4 = inlined_call_operand.vmem [shape: f32[64,1], index: 4, kind: input, shape index: {}]   ;;  %s3201_s5 = inlined_call_operand.vmem [shape: f32[64,64], index: 5, kind: input, shape index: {}]   ;;  %s3202_s6 = inlined_call_operand.vmem [shape: f32[64,1], index: 6, kind: input, shape index: {}]   ;;  %s3203_s7 = inlined_call_operand.vmem [shape: f32[64,64], index: 7, kind: input, shape index: {}]   ;;  %s3204_s8 = inlined_call_operand.vmem [shape: f32[64,1], index: 8, kind: input, shape index: {}]   ;;  %s3205_s9 = inlined_call_operand.vmem [shape: f32[2,64], index: 9, kind: input, shape index: {}]   ;;  %s3206_s10 = inlined_call_operand.vmem [shape: f32[2,1], index: 10, kind: input, shape index: {}]   ;;  %s3207_s11 = inlined_call_operand.hbm [shape: f32[2,1024], index: 11, kind: output, shape index: {}]  }
   0x1   :  { %3250 = sst [smem:[#allocation26_spill]] %s3197_s1 }
   0x2   :  { %16 = vsyncpa [#allocation3], 0 }
   0x3   :  { %18 = vsyncpa [#allocation3 + $0x1], 0  ;;  %s2257_s17 = smov 0   ;;  %s2259_s18 = smov 0  }
   0x4   :  { %s2261_s19 = smov 0   ;;  %s2263_s20 = smov 0  }
   0x5 LB: > { %s2278_s21 = sadd.s32 4294967295, %s2193_s20   ;;  %s1712_s22 = sadd.s32 4294967294, %s2193_s20   ;;  %s2193_s20 = sphi %s2263_s20, %s3299_s20   ;;  %s2189_s19 = sphi %s2261_s19, %s3298_s19   ;;  %s2185_s18 = sphi %s2259_s18, %s3297_s18   ;;  %s2181_s17 = sphi %s2257_s17, %s3296_s17  }
   0x6   : > { %s2282_s23 = sadd.s32 1, %s2193_s20   ;;  %s267_s24 = sadd.s32 1, %s2189_s19 }
   0x7   : > { %s264_s25 = ssub.s32 %s2193_s20, %s2282_s23  ;;  %p277_p0 = scmp.ne.s32.totalorder %s2189_s19, %s2185_s18 }
   0x8   : > { %p265_p1 = scmp.eq.s32.totalorder %s264_s25, 0  ;;  %p278_p2 = scmp.eq.s32.totalorder %s2278_s21, 1 }
   0x9   : > { %p283_p3 = scmp.ne.s32.totalorder %s2185_s18, %s2181_s17  ;;  %p284_p4 = scmp.eq.s32.totalorder %s1712_s22, 1 }
   0xa   : > { %s2293_s26 = scalar_select %p265_p1, %s2189_s19, %s267_s24  }
   0xb   : > { %p2295_p5 = por %p278_p2, %p277_p0  ;;  %p2299_p6 = por %p284_p4, %p283_p3 }
   0xc   : > { %p1715_p7 = scmp.ge.s32.totalorder %s2193_s20, 1  ;;  %p341_p8 = scmp.lt.s32.totalorder %s2193_s20, 3 }
   0xe   : > { %p342_p9 = pnand %p1715_p7, %p341_p8 }
  0x10   : > { %345 = sbr.rel (%p342_p9) target bundleno = 1621 (0x655), region = 64 }
  0x15   : > { %s3253_s1 = sld [smem:[#allocation26_spill]]  ;;  %v2195_v3 = vmov 0   ;;  %v2196_v4 = vmov 1   ;;  %v403_v6 = vld [vmem:[%s3198_s2 + $0x38] sm:$0xff]  ;;  %v402_v8 = vld [vmem:[%s3198_s2 + $0x30] sm:$0xff]  ;;  %v401_v10 = vld [vmem:[%s3198_s2 + $0x28] sm:$0xff] }
  0x16   : > { %1870 = vset.pattern.permute.xlu2 %v2195_v3  ;;  %1868 = vset.pattern.permute.xlu1 %v2195_v3  ;;  %v400_v12 = vld [vmem:[%s3198_s2 + $0x20] sm:$0xff]  ;;  %v399_v14 = vld [vmem:[%s3198_s2 + $0x18] sm:$0xff]  ;;  %v398_v15 = vld [vmem:[%s3198_s2 + $0x10] sm:$0xff]  ;;  %s1717_s24 = sshll.u32 %s2278_s21, 2  ;;  %vm700_vm0 = vcmask 523264   ;;  %s378_s30 = sand.u32 1, %s2185_s18  }
  0x17   : > { %1866 = vset.pattern.permute.xlu0 %v2195_v3  ;;  %v396_v16 = vld [vmem:[%s3198_s2] sm:$0xff]  ;;  %v397_v17 = vld [vmem:[%s3198_s2 + $0x8] sm:$0xff]  ;;  %v419_v18 = vld [vmem:[%s3200_s4 + $0x38] sm:$0xff]  ;;  %p382_p10 = scmp.lt.s32.totalorder %s1717_s24, 7  ;;  %vm1198_vm1 = vcmask 1041408   ;;  %s1824_s14 = sshll.u32 %s2278_s21, 3 }
  0x18   : > { %v415_v19 = vld [vmem:[%s3200_s4 + $0x18] sm:$0xff]  ;;  %v418_v20 = vld [vmem:[%s3200_s4 + $0x30] sm:$0xff]  ;;  %v417_v21 = vld [vmem:[%s3200_s4 + $0x28] sm:$0xff]  ;;  %s1637_s21 = scalar_lea.sflag [#allocation3], %s378_s30 }
  0x19   : > { %v412_v22 = vld [vmem:[%s3200_s4] sm:$0xff]  ;;  %s3301_s24 = smov (!%p382_p10, %s1717_s24), 7  ;;  %v414_v24 = vld [vmem:[%s3200_s4 + $0x10] sm:$0xff]  ;;  %v433_v25 = vld [vmem:[%s3202_s6 + $0x28] sm:$0xff] }
  0x1a   : > { %v416_v23 = vld [vmem:[%s3200_s4 + $0x20] sm:$0xff]  ;;  %s1718_s15 = sshll.u32 %s3301_s24, 1  ;;  %v413_v26 = vld [vmem:[%s3200_s4 + $0x8] sm:$0xff]  ;;  %v435_v30 = vld [vmem:[%s3202_s6 + $0x38] sm:$0xff]  ;;  %s2151_s24 = scalar_lea.hbm %s3207_s11, 16 }
  0x1b   : > { %v395_v0 = vld [vmem:[%s3253_s1 + $0x38] sm:$0xff]  ;;  %v394_v1 = vld [vmem:[%s3253_s1 + $0x30] sm:$0xff]  ;;  %v393_v2 = vld [vmem:[%s3253_s1 + $0x28] sm:$0xff]  ;;  %s2381_s12 = scalar_lea.vmem %s3196_s0, %s1718_s15 }
  0x1c   : > { %487 = vperm.xlu1 %1868, %v394_v1   ;;  %492 = vperm.xlu0 %1866, %v395_v0   ;;  %v392_v5 = vld [vmem:[%s3253_s1 + $0x20] sm:$0xff]  ;;  %v391_v7 = vld [vmem:[%s3253_s1 + $0x18] sm:$0xff]  ;;  %v390_v9 = vld [vmem:[%s3253_s1 + $0x10] sm:$0xff] }
  0x1d   : > { %482 = vperm.xlu2 %1870, %v393_v2   ;;  %v389_v11 = vld [vmem:[%s3253_s1 + $0x8] sm:$0xff]  ;;  %v388_v13 = vld [vmem:[%s3253_s1] sm:$0xff]  ;;  %v430_v31 = vld [vmem:[%s3202_s6 + $0x10] sm:$0xff]  ;;  %s1648_s1 = scalar_lea.hbm %s3207_s11, %s1824_s14 }
  0x1e   : > { %v1202_v27 = vld [vmem:[%s2381_s12 + $0x4] sm:$0xf]  ;;  %v434_v32 = vld [vmem:[%s3202_s6 + $0x30] sm:$0xff]  ;;  %v451_v41 = vld [vmem:[%s3204_s8 + $0x38] sm:$0xff]  ;;  %s1652_s15 = sshll.u32 %s1648_s1, 4  ;;  %s1653_s15 = int_to_ptr.hbm [resolvable:$true] %s1652_s15 }
  0x1f   : > { %v1204_v28 = vperm.slane %v1202_v27, 0  ;;  %v1205_v29 = vperm.slane %v1202_v27, 2  ;;  %v1226_v38 = vperm.slane %v1202_v27, 1  ;;  %v1227_v39 = vperm.slane %v1202_v27, 3  ;;  %v432_v40 = vld [vmem:[%s3202_s6 + $0x20] sm:$0xff]  ;;  %v431_v42 = vld [vmem:[%s3202_s6 + $0x18] sm:$0xff] }
  0x20   : > { %v429_v48 = vld [vmem:[%s3202_s6 + $0x8] sm:$0xff]  ;;  %v448_v49 = vld [vmem:[%s3204_s8 + $0x20] sm:$0xff]  ;;  %v450_v56 = vld [vmem:[%s3204_s8 + $0x30] sm:$0xff]  ;;  %s2145_s25 = sshra.s32 %s1653_s15, 4  ;;  %s2146_s25 = int_to_ptr.hbm [resolvable:$true] %s2145_s25 }
  0x21   : > { %v2396_v33 = vperm.slane %v1204_v28, 0  ;;  %v2398_v34 = vperm.slane %v1205_v29, 0  ;;  %v2415_v43 = vperm.slane %v1226_v38, 1  ;;  %v2417_v44 = vperm.slane %v1227_v39, 1  ;;  %v428_v52 = vld [vmem:[%s3202_s6] sm:$0xff]  ;;  %v445_v57 = vld [vmem:[%s3204_s8 + $0x8] sm:$0xff]  ;;  %p2152_p0 = scmp.lt.s32.totalorder %s2146_s25, %s3207_s11 }
  0x22   : > { %v449_v58 = vld [vmem:[%s3204_s8 + $0x28] sm:$0xff]  ;;  %v453_v28 = vld [vmem:[%s3206_s10] sm:$0x3]  ;;  %s2147_s29 = scalar_lea.hbm %s2146_s25, 8 }
  0x23   : > { %p2148_p11 = scmp.ne.s32.totalorder %s2146_s25, %s2147_s29  ;;  %p2153_p1 = scmp.lt.s32.totalorder %s2151_s24, %s2147_s29 }
  0x24   : > { %1869 = vset.pattern.permute.xlu1 %v2196_v4  ;;  %1867 = vset.pattern.permute.xlu0 %v2196_v4 }
  0x25   : > { %1871 = vset.pattern.permute.xlu2 %v2196_v4  ;;  %547 = vperm.xlu0 %1867, %v395_v0   ;;  %v447_v4 = vld [vmem:[%s3204_s8 + $0x18] sm:$0xff]  ;;  %p2149_p12 = pnand %p2148_p11, %p2295_p5  ;;  %p2154_p2 = por %p2153_p1, %p2152_p0 }
  0x26   : > { %543 = vperm.xlu1 %1869, %v394_v1   ;;  %539 = vperm.xlu2 %1871, %v393_v2  }
  0x27   : > { %p2150_p13 = pneg %p2149_p12 }
  0x29   : > { %p2155_p3 = pnand %p2154_p2, %p2150_p13 }
  0x2d   : > { %535 = vperm.xlu0 %1867, %v392_v5  }
  0x2e   : > { %1872 = vset.pattern.permute.xlu1 %v2195_v3  ;;  %1873 = vset.pattern.permute.xlu2 %v2195_v3 }
  0x2f   : > { %625 = vperm.xlu1 %1872, %v403_v6   ;;  %477 = vperm.xlu2 %1873, %v392_v5   ;;  %v454_v5 = vld [vmem:[%s2381_s12] sm:$0xf]  ;;  %v446_v6 = vld [vmem:[%s3204_s8 + $0x10] sm:$0xff]  ;;  %s1716_s12 = sshll.u32 %s378_s30, 3 }
  0x30   : > { %s3039_s13 = scalar_lea.vmem [#allocation2], %s1716_s12 }
  0x31   : > { %s1650_s22 = sshll.u32 %s3039_s13, 4  ;;  %s1651_s22 = int_to_ptr.vmem [resolvable:$true] %s1650_s22 }
  0x35   : > { %531 = vperm.xlu0 %1867, %v391_v7  }
  0x37   : > { %620 = vperm.xlu1 %1872, %v402_v8   ;;  %472 = vperm.xlu2 %1873, %v391_v7   ;;  %v550_v7 = vperm.slane %v454_v5, 1  ;;  %v551_v8 = vperm.slane %v454_v5, 3 }
  0x3d   : > { %527 = vperm.xlu0 %1867, %v390_v9  }
  0x3f   : > { %615 = vperm.xlu1 %1872, %v401_v10   ;;  %467 = vperm.xlu2 %1873, %v390_v9   ;;  %v496_v9 = vperm.slane %v454_v5, 0 }
  0x45   : > { %523 = vperm.xlu0 %1867, %v389_v11  }
  0x47   : > { %610 = vperm.xlu1 %1872, %v400_v12   ;;  %462 = vperm.xlu2 %1873, %v389_v11   ;;  %v497_v12 = vperm.slane %v454_v5, 2 }
  0x49   : > { %v2506_v27 = vperm.slane %v497_v12, 0 }
  0x4d   : > { %519 = vperm.xlu0 %1867, %v388_v13  }
  0x4f   : > { %605 = vperm.xlu1 %1872, %v399_v14   ;;  %457 = vperm.xlu2 %1873, %v388_v13  }
  0x55   : > { %1874 = vset.pattern.permute.xlu0 %v2195_v3 }
  0x56   : > { %590 = vperm.xlu0 %1874, %v396_v16  }
  0x57   : > { %600 = vperm.xlu1 %1872, %v398_v15   ;;  %595 = vperm.xlu2 %1873, %v397_v17   ;;  %v2484_v15 = vperm.slane %v550_v7, 1 }
  0x5e   : > { %677 = vperm.xlu0 %1874, %v415_v19   ;;  %v2490_v19 = vperm.slane %v551_v8, 1 }
  0x5f   : > { %697 = vperm.xlu1 %1872, %v419_v18   ;;  %692 = vperm.xlu2 %1873, %v418_v20  }
  0x66   : > { %662 = vperm.xlu0 %1874, %v412_v22   ;;  %v2500_v22 = vperm.slane %v496_v9, 0 }
  0x67   : > { %687 = vperm.xlu1 %1872, %v417_v21   ;;  %682 = vperm.xlu2 %1873, %v416_v23   ;;  %v444_v23 = vld [vmem:[%s3204_s8] sm:$0xff] }
  0x6e   : > { %850 = vperm.xlu0 %1874, %v433_v25  }
  0x6f   : > { %672 = vperm.xlu1 %1872, %v414_v24   ;;  %667 = vperm.xlu2 %1873, %v413_v26  }
  0x76   : > { %835 = vperm.xlu0 %1874, %v430_v31  }
  0x77   : > { %860 = vperm.xlu1 %1872, %v435_v30   ;;  %v2400_v35 = vpop.permute.xlu2 %482  ;;  %855 = vperm.xlu2 %1873, %v434_v32  }
  0x78   : > { %v1220_v36 = vmul.f32 %v2396_v33, %v2400_v35  ;;  %v1221_v37 = vmul.f32 %v2398_v34, %v2400_v35  ;;  %v512_v12 = vmul.f32 %v2500_v22, %v2400_v35 }
  0x7e   : > { %1022 = vperm.xlu0 %1874, %v451_v41  }
  0x7f   : > { %845 = vperm.xlu1 %1872, %v432_v40   ;;  %840 = vperm.xlu2 %1873, %v431_v42  }
  0x80   : > { %v2419_v45 = vpop.permute.xlu2 %539 }
  0x81   : > { %v1242_v46 = vmul.f32 %v2415_v43, %v2419_v45  ;;  %v1243_v47 = vmul.f32 %v2417_v44, %v2419_v45 }
  0x83   : > { %v2431_v50 = vadd.f32 %v1242_v46, %v1220_v36  ;;  %v2433_v51 = vadd.f32 %v1243_v47, %v1221_v37 }
  0x86   : > { %1007 = vperm.xlu0 %1874, %v448_v49  }
  0x87   : > { %830 = vperm.xlu1 %1872, %v429_v48   ;;  %825 = vperm.xlu2 %1873, %v428_v52  }
  0x89   : > { %v2438_v53 = vpop.permute.xlu2 %477 }
  0x8a   : > { %v2442_v54 = vmul.f32 %v2396_v33, %v2438_v53  ;;  %v2446_v55 = vmul.f32 %v2398_v34, %v2438_v53 }
  0x8e   : > { %v2457_v59 = vpop.permute.xlu1 %487  ;;  %v493_v62 = vpop.permute.xlu0 %492  ;;  %992 = vperm.xlu0 %1874, %v445_v57  }
  0x8f   : > { %1017 = vperm.xlu1 %1872, %v450_v56   ;;  %v1222_v60 = vmul.f32 %v2396_v33, %v2457_v59  ;;  %v1223_v61 = vmul.f32 %v2398_v34, %v2457_v59  ;;  %1012 = vperm.xlu2 %1873, %v449_v58   ;;  %v1224_v63 = vmul.f32 %v2396_v33, %v493_v62 }
  0x90   : > { %v1225_v0 = vmul.f32 %v2398_v34, %v493_v62  ;;  %v516_v32 = vmul.f32 %v2500_v22, %v493_v62  ;;  %v517_v36 = vmul.f32 %v2506_v27, %v493_v62 }
  0x91   : > { %v2465_v1 = vpop.permute.xlu2 %472 }
  0x92   : > { %v2469_v2 = vmul.f32 %v2396_v33, %v2465_v1  ;;  %v2473_v3 = vmul.f32 %v2398_v34, %v2465_v1 }
  0x97   : > { %1002 = vperm.xlu1 %1872, %v447_v4   ;;  %997 = vperm.xlu2 %1873, %v446_v6   ;;  %v548_v10 = vpop.permute.xlu0 %547 }
  0x98   : > { %v544_v11 = vpop.permute.xlu1 %543  ;;  %v1246_v13 = vmul.f32 %v2415_v43, %v548_v10  ;;  %v1247_v14 = vmul.f32 %v2417_v44, %v548_v10  ;;  %v570_v26 = vmul.f32 %v2484_v15, %v548_v10  ;;  %v571_v31 = vmul.f32 %v2490_v19, %v548_v10 }
  0x99   : > { %v1244_v16 = vmul.f32 %v2415_v43, %v544_v11  ;;  %v1245_v17 = vmul.f32 %v2417_v44, %v544_v11  ;;  %v2488_v18 = vpop.permute.xlu2 %467  ;;  %v568_v58 = vmul.f32 %v2484_v15, %v544_v11 }
  0x9a   : > { %v2494_v20 = vmul.f32 %v2396_v33, %v2488_v18  ;;  %v2498_v21 = vmul.f32 %v2398_v34, %v2488_v18  ;;  %v1262_v24 = vadd.f32 %v1246_v13, %v1224_v63  ;;  %v1263_v25 = vadd.f32 %v1247_v14, %v1225_v0 }
  0x9b   : > { %v1260_v29 = vadd.f32 %v1244_v16, %v1222_v60  ;;  %v1261_v30 = vadd.f32 %v1245_v17, %v1223_v61  ;;  %v586_v38 = vadd.f32 %v570_v26, %v516_v32  ;;  %v587_v42 = vadd.f32 %v571_v31, %v517_v36 }
  0x9c   : > { %v569_v60 = vmul.f32 %v2490_v19, %v544_v11  ;;  %v514_v63 = vmul.f32 %v2500_v22, %v2457_v59  ;;  %v515_v0 = vmul.f32 %v2506_v27, %v2457_v59  ;;  %v513_v13 = vmul.f32 %v2506_v27, %v2400_v35 }
  0x9e   : > { %v584_v5 = vadd.f32 %v568_v58, %v514_v63  ;;  %v585_v6 = vadd.f32 %v569_v60, %v515_v0 }
  0x9f   : > { %987 = vperm.xlu1 %1872, %v444_v23   ;;  %1149 = vperm.xlu2 %1873, %v453_v28   ;;  %v2514_v37 = vpop.permute.xlu0 %535  ;;  %v566_v23 = vmul.f32 %v2484_v15, %v2419_v45 }
  0xa0   : > { %v1240_v39 = vmul.f32 %v2415_v43, %v2514_v37  ;;  %v1241_v40 = vmul.f32 %v2417_v44, %v2514_v37 }
  0xa1   : > { %v626_v41 = vpop.permute.xlu1 %625  ;;  %v2524_v48 = vpop.permute.xlu2 %462  ;;  %v582_v26 = vadd.f32 %v566_v23, %v512_v12 }
  0xa2   : > { %v2520_v46 = vadd.f32 %v1262_v24, %v626_v41  ;;  %v2522_v47 = vadd.f32 %v1263_v25, %v626_v41  ;;  %v642_v49 = vadd.f32 %v626_v41, %v586_v38  ;;  %v2528_v52 = vmul.f32 %v2396_v33, %v2524_v48 }
  0xa3   : > { %v2532_v56 = vmul.f32 %v2398_v34, %v2524_v48  ;;  %v643_v57 = vadd.f32 %v626_v41, %v587_v42  ;;  %v1256_v61 = vadd.f32 %v1240_v39, %v2442_v54  ;;  %v1257_v62 = vadd.f32 %v1241_v40, %v2446_v55 }
  0xa4   : > { %1875 = vtanh.f32 %v642_v49  ;;  %v567_v24 = vmul.f32 %v2490_v19, %v2419_v45  ;;  %v510_v39 = vmul.f32 %v2500_v22, %v2438_v53  ;;  %v511_v42 = vmul.f32 %v2506_v27, %v2438_v53 }
  0xa5   : > { %1877 = vtanh.f32 %v643_v57 }
  0xa6   : > { %v583_v28 = vadd.f32 %v567_v24, %v513_v13 }
  0xa7   : > { %v2542_v4 = vpop.permute.xlu0 %531 }
  0xa8   : > { %v1238_v7 = vmul.f32 %v2415_v43, %v2542_v4  ;;  %v1239_v54 = vmul.f32 %v2417_v44, %v2542_v4 }
  0xa9   : > { %v621_v8 = vpop.permute.xlu1 %620  ;;  %v2552_v59 = vpop.permute.xlu2 %457 }
  0xaa   : > { %v640_v55 = vadd.f32 %v621_v8, %v584_v5  ;;  %v641_v9 = vadd.f32 %v621_v8, %v585_v6  ;;  %v2548_v10 = vadd.f32 %v1260_v29, %v621_v8  ;;  %v2550_v11 = vadd.f32 %v1261_v30, %v621_v8  ;;  %v1876_v17 = vpop.eup %1875 }
  0xab   : > { %v2560_v14 = vmul.f32 %v2396_v33, %v2552_v59  ;;  %v2564_v16 = vmul.f32 %v2398_v34, %v2552_v59  ;;  %v2571_v25 = vadd.f32 %v1238_v7, %v2469_v2  ;;  %v1878_v35 = vpop.eup %1877  ;;  %733 = vmatpush.msra.mxu0 %v1876_v17  ;;  %v2574_v33 = vadd.f32 %v1239_v54, %v2473_v3 }
  0xac   : > { %1879 = vtanh.f32 %v640_v55  ;;  %774 = vmatpush.msra.mxu1 %v1878_v35  ;;  %v562_v8 = vmul.f32 %v2484_v15, %v2542_v4  ;;  %v563_v55 = vmul.f32 %v2490_v19, %v2542_v4 }
  0xad   : > { %1881 = vtanh.f32 %v641_v9 }
  0xaf   : > { %v2576_v34 = vpop.permute.xlu0 %527 }
  0xb0   : > { %v1236_v29 = vmul.f32 %v2415_v43, %v2576_v34  ;;  %v1237_v45 = vmul.f32 %v2417_v44, %v2576_v34 }
  0xb1   : > { %v616_v30 = vpop.permute.xlu1 %615  ;;  %v596_v9 = vpop.permute.xlu2 %595 }
  0xb2   : > { %v1880_v2 = vpop.eup %1879  ;;  %v638_v31 = vadd.f32 %v616_v30, %v582_v26  ;;  %v639_v32 = vadd.f32 %v616_v30, %v583_v28  ;;  %v2583_v36 = vadd.f32 %v2431_v50, %v616_v30  ;;  %v2586_v3 = vadd.f32 %v2433_v51, %v616_v30 }
  0xb3   : > { %v1882_v38 = vpop.eup %1881  ;;  %734 = vmatpush.msra.mxu0 %v1880_v2  ;;  %v2591_v40 = vadd.f32 %v1236_v29, %v2494_v20  ;;  %v2594_v41 = vadd.f32 %v1237_v45, %v2498_v21  ;;  %v564_v50 = vmul.f32 %v2484_v15, %v2514_v37  ;;  %v565_v51 = vmul.f32 %v2490_v19, %v2514_v37 }
  0xb4   : > { %1883 = vtanh.f32 %v638_v31  ;;  %775 = vmatpush.msra.mxu1 %v1882_v38  ;;  %v505_v38 = vmul.f32 %v2506_v27, %v2524_v48 }
  0xb5   : > { %1885 = vtanh.f32 %v639_v32  ;;  %v580_v57 = vadd.f32 %v564_v50, %v510_v39  ;;  %v581_v58 = vadd.f32 %v565_v51, %v511_v42  ;;  %v561_v32 = vmul.f32 %v2490_v19, %v2576_v34 }
  0xb6   : > { %v507_v42 = vmul.f32 %v2506_v27, %v2488_v18 }
  0xb7   : > { %v524_v49 = vpop.permute.xlu0 %523 }
  0xb8   : > { %v1234_v20 = vmul.f32 %v2415_v43, %v524_v49  ;;  %v1235_v21 = vmul.f32 %v2417_v44, %v524_v49  ;;  %v558_v23 = vmul.f32 %v2484_v15, %v524_v49  ;;  %v559_v2 = vmul.f32 %v2490_v19, %v524_v49 }
  0xb9   : > { %v611_v60 = vpop.permute.xlu1 %610  ;;  %v577_v49 = vadd.f32 %v561_v32, %v507_v42 }
  0xba   : > { %v1884_v63 = vpop.eup %1883  ;;  %v636_v0 = vadd.f32 %v611_v60, %v580_v57  ;;  %v637_v53 = vadd.f32 %v611_v60, %v581_v58  ;;  %v2604_v5 = vadd.f32 %v1256_v61, %v611_v60  ;;  %v2606_v6 = vadd.f32 %v1257_v62, %v611_v60 }
  0xbb   : > { %v1886_v7 = vpop.eup %1885  ;;  %v1250_v37 = vadd.f32 %v1234_v20, %v2528_v52  ;;  %v1251_v54 = vadd.f32 %v1235_v21, %v2532_v56  ;;  %735 = vmatpush.msra.mxu0 %v1884_v63  ;;  %v508_v52 = vmul.f32 %v2500_v22, %v2465_v1  ;;  %v509_v56 = vmul.f32 %v2506_v27, %v2465_v1 }
  0xbc   : > { %1887 = vtanh.f32 %v636_v0  ;;  %776 = vmatpush.msra.mxu1 %v1886_v7  ;;  %v504_v1 = vmul.f32 %v2500_v22, %v2524_v48  ;;  %v575_v50 = vadd.f32 %v559_v2, %v505_v38  ;;  %v503_v48 = vmul.f32 %v2506_v27, %v2552_v59 }
  0xbd   : > { %v2614_v12 = vadd.f32 %v1250_v37, %v596_v9  ;;  %v2616_v61 = vadd.f32 %v1251_v54, %v596_v9  ;;  %1889 = vtanh.f32 %v637_v53  ;;  %v578_v13 = vadd.f32 %v562_v8, %v508_v52 }
  0xbe   : > { %v579_v17 = vadd.f32 %v563_v55, %v509_v56  ;;  %v574_v39 = vadd.f32 %v558_v23, %v504_v1  ;;  %v631_v27 = vadd.f32 %v596_v9, %v575_v50  ;;  %v2665_v55 = vld [vmem:[%s3199_s3] sm:$0xff]  ;;  %v2674_v56 = vld [vmem:[%s3199_s3 + $0x8] sm:$0xff] }
  0xbf   : > { %v520_v62 = vpop.permute.xlu0 %519  ;;  %v2710_v23 = vld [vmem:[%s3199_s3 + $0x28] sm:$0xff] }
  0xc0   : > { %v1232_v4 = vmul.f32 %v2415_v43, %v520_v62  ;;  %v1233_v26 = vmul.f32 %v2417_v44, %v520_v62  ;;  %v560_v44 = vmul.f32 %v2484_v15, %v2576_v34  ;;  %v502_v34 = vmul.f32 %v2500_v22, %v2552_v59 }
  0xc1   : > { %v606_v24 = vpop.permute.xlu1 %605  ;;  %v557_v51 = vmul.f32 %v2490_v19, %v520_v62  ;;  %v630_v20 = vadd.f32 %v596_v9, %v574_v39 }
  0xc2   : > { %v1888_v35 = vpop.eup %1887  ;;  %v634_v28 = vadd.f32 %v606_v24, %v578_v13  ;;  %v635_v29 = vadd.f32 %v606_v24, %v579_v17  ;;  %v2626_v45 = vadd.f32 %v2571_v25, %v606_v24  ;;  %v2632_v31 = vadd.f32 %v2574_v33, %v606_v24  ;;  %v2692_v13 = vld [vmem:[%s3199_s3 + $0x18] sm:$0xff]  ;;  %v2701_v17 = vld [vmem:[%s3199_s3 + $0x20] sm:$0xff] }
  0xc3   : > { %v1890_v30 = vpop.eup %1889  ;;  %736 = vmatpush.msra.mxu0 %v1888_v35  ;;  %v1248_v43 = vadd.f32 %v1232_v4, %v2560_v14  ;;  %v1249_v25 = vadd.f32 %v1233_v26, %v2564_v16  ;;  %v556_v33 = vmul.f32 %v2484_v15, %v520_v62  ;;  %v506_v14 = vmul.f32 %v2500_v22, %v2488_v18  ;;  %v2683_v62 = vld [vmem:[%s3199_s3 + $0x10] sm:$0xff]  ;;  %v2728_v24 = vld [vmem:[%s3199_s3 + $0x38] sm:$0xff] }
  0xc4   : > { %1891 = vtanh.f32 %v634_v28  ;;  %777 = vmatpush.msra.mxu1 %v1890_v30  ;;  %v573_v19 = vadd.f32 %v557_v51, %v503_v48  ;;  %v2719_v4 = vld [vmem:[%s3199_s3 + $0x30] sm:$0xff] }
  0xc5   : > { %1893 = vtanh.f32 %v635_v29  ;;  %v576_v16 = vadd.f32 %v560_v44, %v506_v14  ;;  %v572_v58 = vadd.f32 %v556_v33, %v502_v34  ;;  %v2736_v33 = vpop.permute.xlu2 %692 }
  0xc8   : > { %v591_v15 = vpop.permute.xlu0 %590 }
  0xc9   : > { %v601_v57 = vpop.permute.xlu1 %600  ;;  %v2658_v53 = vadd.f32 %v1248_v43, %v591_v15  ;;  %v2660_v7 = vadd.f32 %v1249_v25, %v591_v15  ;;  %v628_v59 = vadd.f32 %v591_v15, %v572_v58  ;;  %v629_v37 = vadd.f32 %v591_v15, %v573_v19 }
  0xca   : > { %v1892_v21 = vpop.eup %1891  ;;  %v632_v60 = vadd.f32 %v601_v57, %v576_v16  ;;  %v633_v63 = vadd.f32 %v601_v57, %v577_v49  ;;  %v2653_v18 = vadd.f32 %v2591_v40, %v601_v57  ;;  %v2656_v22 = vadd.f32 %v2594_v41, %v601_v57 }
  0xcb   : > { %v1894_v0 = vpop.eup %1893  ;;  %737 = vmatpush.msra.mxu0 %v1892_v21 }
  0xcc   : > { %1895 = vtanh.f32 %v632_v60  ;;  %778 = vmatpush.msra.mxu1 %v1894_v0 }
  0xcd   : > { %1897 = vtanh.f32 %v633_v63  ;;  %v2740_v50 = vpop.permute.xlu2 %682 }
  0xce   : > { %1899 = vtanh.f32 %v630_v20 }
  0xcf   : > { %1901 = vtanh.f32 %v631_v27 }
  0xd0   : > { %1903 = vtanh.f32 %v628_v59  ;;  %v2744_v57 = vpop.permute.xlu0 %677 }
  0xd1   : > { %1905 = vtanh.f32 %v629_v37  ;;  %v2734_v39 = vpop.permute.xlu1 %697 }
  0xd2   : > { %v1896_v40 = vpop.eup %1895 }
  0xd3   : > { %v1898_v41 = vpop.eup %1897  ;;  %738 = vmatpush.msra.mxu0 %v1896_v40 }
  0xd4   : > { %v1900_v54 = vpop.eup %1899  ;;  %779 = vmatpush.msra.mxu1 %v1898_v41 }
  0xd5   : > { %v1902_v8 = vpop.eup %1901  ;;  %739 = vmatpush.msra.mxu0 %v1900_v54  ;;  %v2757_v41 = vpop.permute.xlu2 %667 }
  0xd6   : > { %v1904_v9 = vpop.eup %1903  ;;  %780 = vmatpush.msra.mxu1 %v1902_v8 }
  0xd7   : > { %v1906_v52 = vpop.eup %1905  ;;  %740 = vmatpush.msra.mxu0 %v1904_v9 }
  0xd8   : > { %781 = vmatpush.msra.mxu1 %v1906_v52  ;;  %1719 = vmatmul.msk.f32.vlgmr.msra.gmra.mxu0 %vm700_vm0, %v2665_v55 }
  0xd9   : > { %1727 = vmatmul.msk.f32.vlgmr.msra.gmra.mxu1 %vm700_vm0, %v2665_v55  ;;  %v2738_v34 = vpop.permute.xlu1 %687 }
  0xe0   : > { %1720 = vmatmul.msk.f32.gmra.mxu0 %vm700_vm0, %v2674_v56 }
  0xe1   : > { %1728 = vmatmul.msk.f32.gmra.mxu1 %vm700_vm0, %v2674_v56  ;;  %v2753_v19 = vpop.permute.xlu1 %672 }
  0xe8   : > { %1721 = vmatmul.msk.f32.gmra.mxu0 %vm700_vm0, %v2683_v62 }
  0xe9   : > { %1729 = vmatmul.msk.f32.gmra.mxu1 %vm700_vm0, %v2683_v62 }
  0xf0   : > { %1722 = vmatmul.msk.f32.gmra.mxu0 %vm700_vm0, %v2692_v13 }
  0xf1   : > { %1730 = vmatmul.msk.f32.gmra.mxu1 %vm700_vm0, %v2692_v13 }
  0xf8   : > { %1723 = vmatmul.msk.f32.gmra.mxu0 %vm700_vm0, %v2701_v17 }
  0xf9   : > { %1731 = vmatmul.msk.f32.gmra.mxu1 %vm700_vm0, %v2701_v17 }
 0x100   : > { %1724 = vmatmul.msk.f32.gmra.mxu0 %vm700_vm0, %v2710_v23 }
 0x101   : > { %1732 = vmatmul.msk.f32.gmra.mxu1 %vm700_vm0, %v2710_v23 }
 0x108   : > { %1725 = vmatmul.msk.f32.gmra.mxu0 %vm700_vm0, %v2719_v4 }
 0x109   : > { %1733 = vmatmul.msk.f32.gmra.mxu1 %vm700_vm0, %v2719_v4 }
 0x110   : > { %1726 = vmatmul.msk.f32.gmra.mxu0 %vm700_vm0, %v2728_v24 }
 0x111   : > { %1734 = vmatmul.msk.f32.gmra.mxu1 %vm700_vm0, %v2728_v24 }
 0x155   : > { %v742_v35 = vpop.f32.mrf.mxu0 }
 0x156   : > { %v783_v26 = vpop.f32.mrf.mxu1 }
 0x15d   : > { %v745_v28 = vpop.f32.mrf.mxu0 }
 0x15e   : > { %v786_v29 = vpop.f32.mrf.mxu1  ;;  %v746_v9 = vadd.f32 %v745_v28, %v2757_v41 }
 0x165   : > { %v748_v30 = vpop.f32.mrf.mxu0 }
 0x166   : > { %v789_v1 = vpop.f32.mrf.mxu1  ;;  %v749_v37 = vadd.f32 %v748_v30, %v2753_v19 }
 0x167   : > { %v790_v54 = vadd.f32 %v789_v1, %v2753_v19 }
 0x16d   : > { %v751_v2 = vpop.f32.mrf.mxu0 }
 0x16e   : > { %v792_v43 = vpop.f32.mrf.mxu1  ;;  %v752_v0 = vadd.f32 %v751_v2, %v2744_v57  ;;  %v2761_v2 = vpop.permute.xlu0 %662 }
 0x16f   : > { %v793_v27 = vadd.f32 %v792_v43, %v2744_v57  ;;  %v787_v43 = vadd.f32 %v786_v29, %v2757_v41 }
 0x175   : > { %v754_v44 = vpop.f32.mrf.mxu0 }
 0x176   : > { %v795_v32 = vpop.f32.mrf.mxu1  ;;  %v755_v60 = vadd.f32 %v754_v44, %v2740_v50  ;;  %v743_v44 = vadd.f32 %v742_v35, %v2761_v2 }
 0x177   : > { %v796_v63 = vadd.f32 %v795_v32, %v2740_v50  ;;  %v784_v32 = vadd.f32 %v783_v26, %v2761_v2 }
 0x17d   : > { %v757_v25 = vpop.f32.mrf.mxu0 }
 0x17e   : > { %v798_v38 = vpop.f32.mrf.mxu1  ;;  %v758_v20 = vadd.f32 %v757_v25, %v2738_v34 }
 0x17f   : > { %v799_v21 = vadd.f32 %v798_v38, %v2738_v34 }
 0x185   : > { %v760_v14 = vpop.f32.mrf.mxu0 }
 0x186   : > { %v801_v42 = vpop.f32.mrf.mxu1  ;;  %v761_v16 = vadd.f32 %v760_v14, %v2736_v33 }
 0x187   : > { %v802_v15 = vadd.f32 %v801_v42, %v2736_v33 }
 0x18d   : > { %v763_v51 = vpop.f32.mrf.mxu0 }
 0x18e   : > { %v764_v49 = vadd.f32 %v763_v51, %v2734_v39  ;;  %v804_v48 = vpop.f32.mrf.mxu1  ;;  %v2769_v51 = vld [vmem:[%s3201_s5] sm:$0xff] }
 0x18f   : > { %v805_v58 = vadd.f32 %v804_v48, %v2734_v39  ;;  %v2778_v48 = vld [vmem:[%s3201_s5 + $0x8] sm:$0xff] }
 0x190   : > { %1907 = vtanh.f32 %v764_v49 }
 0x191   : > { %1909 = vtanh.f32 %v805_v58  ;;  %v2796_v58 = vld [vmem:[%s3201_s5 + $0x18] sm:$0xff] }
 0x192   : > { %1911 = vtanh.f32 %v761_v16  ;;  %3254 = vst [vmem:[#allocation5_spill] sm:$0xff] %v2796_v58 }
 0x193   : > { %1913 = vtanh.f32 %v802_v15  ;;  %v2787_v15 = vld [vmem:[%s3201_s5 + $0x10] sm:$0xff] }
 0x194   : > { %1915 = vtanh.f32 %v758_v20  ;;  %v2805_v20 = vld [vmem:[%s3201_s5 + $0x20] sm:$0xff] }
 0x195   : > { %1917 = vtanh.f32 %v799_v21  ;;  %3255 = vst [vmem:[#allocation6_spill] sm:$0xff] %v2805_v20  ;;  %v2814_v21 = vld [vmem:[%s3201_s5 + $0x28] sm:$0xff] }
 0x196   : > { %v1908_v59 = vpop.eup %1907  ;;  %1919 = vtanh.f32 %v755_v60  ;;  %3256 = vst [vmem:[#allocation7_spill] sm:$0xff] %v2814_v21  ;;  %v2823_v60 = vld [vmem:[%s3201_s5 + $0x30] sm:$0xff] }
 0x197   : > { %v1910_v40 = vpop.eup %1909  ;;  %1921 = vtanh.f32 %v796_v63  ;;  %895 = vmatpush.msra.mxu2 %v1908_v59  ;;  %3257 = vst [vmem:[#allocation8_spill] sm:$0xff] %v2823_v60  ;;  %v2832_v63 = vld [vmem:[%s3201_s5 + $0x38] sm:$0xff] }
 0x198   : > { %v1912_v8 = vpop.eup %1911  ;;  %1923 = vtanh.f32 %v752_v0  ;;  %936 = vmatpush.msra.mxu3 %v1910_v40  ;;  %3258 = vst [vmem:[#allocation9_spill] sm:$0xff] %v2832_v63 }
 0x199   : > { %v1914_v52 = vpop.eup %1913  ;;  %1925 = vtanh.f32 %v793_v27  ;;  %896 = vmatpush.msra.mxu2 %v1912_v8 }
 0x19a   : > { %v1916_v30 = vpop.eup %1915  ;;  %1927 = vtanh.f32 %v749_v37  ;;  %937 = vmatpush.msra.mxu3 %v1914_v52 }
 0x19b   : > { %v1918_v1 = vpop.eup %1917  ;;  %1929 = vtanh.f32 %v790_v54  ;;  %897 = vmatpush.msra.mxu2 %v1916_v30 }
 0x19c   : > { %v1920_v28 = vpop.eup %1919  ;;  %1931 = vtanh.f32 %v746_v9  ;;  %938 = vmatpush.msra.mxu3 %v1918_v1  ;;  %v2838_v1 = vpop.permute.xlu1 %860 }
 0x19d   : > { %v1922_v25 = vpop.eup %1921  ;;  %1933 = vtanh.f32 %v787_v43  ;;  %898 = vmatpush.msra.mxu2 %v1920_v28  ;;  %3259 = vst [vmem:[#allocation10_spill] sm:$0xff] %v2838_v1 }
 0x19e   : > { %v1924_v38 = vpop.eup %1923  ;;  %1935 = vtanh.f32 %v743_v44  ;;  %939 = vmatpush.msra.mxu3 %v1922_v25 }
 0x19f   : > { %v1926_v29 = vpop.eup %1925  ;;  %1937 = vtanh.f32 %v784_v32  ;;  %899 = vmatpush.msra.mxu2 %v1924_v38  ;;  %v2840_v32 = vpop.permute.xlu2 %855 }
 0x1a0   : > { %v1928_v35 = vpop.eup %1927  ;;  %940 = vmatpush.msra.mxu3 %v1926_v29  ;;  %3260 = vst [vmem:[#allocation11_spill] sm:$0xff] %v2840_v32  ;;  %v2842_v38 = vpop.permute.xlu0 %850 }
 0x1a1   : > { %v1930_v14 = vpop.eup %1929  ;;  %900 = vmatpush.msra.mxu2 %v1928_v35  ;;  %3261 = vst [vmem:[#allocation12_spill] sm:$0xff] %v2842_v38 }
 0x1a2   : > { %v1932_v42 = vpop.eup %1931  ;;  %941 = vmatpush.msra.mxu3 %v1930_v14 }
 0x1a3   : > { %v1934_v26 = vpop.eup %1933  ;;  %901 = vmatpush.msra.mxu2 %v1932_v42 }
 0x1a4   : > { %v1936_v16 = vpop.eup %1935  ;;  %942 = vmatpush.msra.mxu3 %v1934_v26  ;;  %v2844_v29 = vpop.permute.xlu1 %845 }
 0x1a5   : > { %v1938_v49 = vpop.eup %1937  ;;  %902 = vmatpush.msra.mxu2 %v1936_v16  ;;  %3262 = vst [vmem:[#allocation13_spill] sm:$0xff] %v2844_v29 }
 0x1a6   : > { %943 = vmatpush.msra.mxu3 %v1938_v49  ;;  %1735 = vmatmul.msk.f32.vlgmr.msra.gmra.mxu2 %vm700_vm0, %v2769_v51 }
 0x1a7   : > { %1743 = vmatmul.msk.f32.vlgmr.msra.gmra.mxu3 %vm700_vm0, %v2769_v51  ;;  %v2848_v16 = vpop.permute.xlu2 %840 }
 0x1a8   : > { %3263 = vst [vmem:[#allocation14_spill] sm:$0xff] %v2848_v16 }
 0x1ae   : > { %1736 = vmatmul.msk.f32.gmra.mxu2 %vm700_vm0, %v2778_v48 }
 0x1af   : > { %1744 = vmatmul.msk.f32.gmra.mxu3 %vm700_vm0, %v2778_v48 }
 0x1b6   : > { %1737 = vmatmul.msk.f32.gmra.mxu2 %vm700_vm0, %v2787_v15 }
 0x1b7   : > { %1745 = vmatmul.msk.f32.gmra.mxu3 %vm700_vm0, %v2787_v15 }
 0x1be   : > { %1738 = vmatmul.msk.f32.gmra.mxu2 %vm700_vm0, %v2796_v58 }
 0x1bf   : > { %1746 = vmatmul.msk.f32.gmra.mxu3 %vm700_vm0, %v2796_v58  ;;  %v2857_v58 = vpop.permute.xlu0 %835 }
 0x1c0   : > { %3264 = vst [vmem:[#allocation15_spill] sm:$0xff] %v2857_v58 }
 0x1c6   : > { %1739 = vmatmul.msk.f32.gmra.mxu2 %vm700_vm0, %v2805_v20 }
 0x1c7   : > { %1747 = vmatmul.msk.f32.gmra.mxu3 %vm700_vm0, %v2805_v20 }
 0x1ce   : > { %1740 = vmatmul.msk.f32.gmra.mxu2 %vm700_vm0, %v2814_v21 }
 0x1cf   : > { %1748 = vmatmul.msk.f32.gmra.mxu3 %vm700_vm0, %v2814_v21 }
 0x1d6   : > { %1741 = vmatmul.msk.f32.gmra.mxu2 %vm700_vm0, %v2823_v60 }
 0x1d7   : > { %1749 = vmatmul.msk.f32.gmra.mxu3 %vm700_vm0, %v2823_v60 }
 0x1de   : > { %1742 = vmatmul.msk.f32.gmra.mxu2 %vm700_vm0, %v2832_v63 }
 0x1df   : > { %1750 = vmatmul.msk.f32.gmra.mxu3 %vm700_vm0, %v2832_v63 }
 0x229   : > { %v904_v0 = vpop.f32.mrf.mxu2 }
 0x22a   : > { %v945_v27 = vpop.f32.mrf.mxu3 }
 0x231   : > { %v907_v59 = vpop.f32.mrf.mxu2 }
 0x232   : > { %v948_v37 = vpop.f32.mrf.mxu3 }
 0x239   : > { %v910_v40 = vpop.f32.mrf.mxu2 }
 0x23a   : > { %v951_v54 = vpop.f32.mrf.mxu3 }
 0x241   : > { %v913_v8 = vpop.f32.mrf.mxu2 }
 0x242   : > { %v954_v9 = vpop.f32.mrf.mxu3 }
 0x249   : > { %v916_v52 = vpop.f32.mrf.mxu2 }
 0x24a   : > { %v957_v43 = vpop.f32.mrf.mxu3  ;;  %v917_v20 = vadd.f32 %v916_v52, %v2844_v29  ;;  %v952_v52 = vadd.f32 %v951_v54, %v2857_v58 }
 0x251   : > { %v919_v30 = vpop.f32.mrf.mxu2 }
 0x252   : > { %v960_v44 = vpop.f32.mrf.mxu3  ;;  %v920_v60 = vadd.f32 %v919_v30, %v2842_v38  ;;  %v911_v30 = vadd.f32 %v910_v40, %v2857_v58 }
 0x253   : > { %v961_v21 = vadd.f32 %v960_v44, %v2842_v38 }
 0x259   : > { %v922_v28 = vpop.f32.mrf.mxu2 }
 0x25a   : > { %v963_v25 = vpop.f32.mrf.mxu3  ;;  %v923_v14 = vadd.f32 %v922_v28, %v2840_v32  ;;  %v958_v28 = vadd.f32 %v957_v43, %v2844_v29 }
 0x25b   : > { %v964_v49 = vadd.f32 %v963_v25, %v2840_v32  ;;  %v955_v25 = vadd.f32 %v954_v9, %v2848_v16 }
 0x261   : > { %v925_v35 = vpop.f32.mrf.mxu2 }
 0x262   : > { %v926_v42 = vadd.f32 %v925_v35, %v2838_v1  ;;  %v966_v26 = vpop.f32.mrf.mxu3  ;;  %v914_v35 = vadd.f32 %v913_v8, %v2848_v16 }
 0x263   : > { %v967_v63 = vadd.f32 %v966_v26, %v2838_v1 }
 0x264   : > { %1939 = vtanh.f32 %v926_v42 }
 0x265   : > { %1941 = vtanh.f32 %v967_v63  ;;  %v2861_v63 = vpop.permute.xlu1 %830 }
 0x266   : > { %1943 = vtanh.f32 %v923_v14  ;;  %3265 = vst [vmem:[#allocation16_spill] sm:$0xff] %v2861_v63  ;;  %v908_v8 = vadd.f32 %v907_v59, %v2861_v63  ;;  %v2865_v14 = vpop.permute.xlu2 %825 }
 0x267   : > { %1945 = vtanh.f32 %v964_v49  ;;  %3266 = vst [vmem:[#allocation17_spill] sm:$0xff] %v2865_v14  ;;  %v905_v40 = vadd.f32 %v904_v0, %v2865_v14  ;;  %v946_v9 = vadd.f32 %v945_v27, %v2865_v14 }
 0x268   : > { %1947 = vtanh.f32 %v920_v60 }
 0x269   : > { %1949 = vtanh.f32 %v961_v21  ;;  %v949_v21 = vadd.f32 %v948_v37, %v2861_v63 }
 0x26a   : > { %v1940_v26 = vpop.eup %1939  ;;  %1951 = vtanh.f32 %v917_v20 }
 0x26b   : > { %v1942_v44 = vpop.eup %1941  ;;  %1953 = vtanh.f32 %v958_v28  ;;  %1057 = vmatpush.msrb.mxu0 %v1940_v26 }
 0x26c   : > { %v1944_v43 = vpop.eup %1943  ;;  %1955 = vtanh.f32 %v914_v35  ;;  %1098 = vmatpush.msrb.mxu1 %v1942_v44  ;;  %v2882_v44 = vld [vmem:[%s3203_s7 + $0x8] sm:$0xff] }
 0x26d   : > { %v1946_v60 = vpop.eup %1945  ;;  %1957 = vtanh.f32 %v955_v25  ;;  %1058 = vmatpush.msrb.mxu0 %v1944_v43  ;;  %v2873_v25 = vld [vmem:[%s3203_s7] sm:$0xff]  ;;  %3268 = vst [vmem:[#allocation19_spill] sm:$0xff] %v2882_v44  ;;  %v2900_v43 = vld [vmem:[%s3203_s7 + $0x18] sm:$0xff] }
 0x26e   : > { %v1948_v20 = vpop.eup %1947  ;;  %1959 = vtanh.f32 %v911_v30  ;;  %1099 = vmatpush.msrb.mxu1 %v1946_v60  ;;  %3267 = vst [vmem:[#allocation18_spill] sm:$0xff] %v2873_v25  ;;  %v2918_v60 = vld [vmem:[%s3203_s7 + $0x28] sm:$0xff] }
 0x26f   : > { %v1950_v54 = vpop.eup %1949  ;;  %1961 = vtanh.f32 %v952_v52  ;;  %1059 = vmatpush.msrb.mxu0 %v1948_v20  ;;  %v2891_v52 = vld [vmem:[%s3203_s7 + $0x10] sm:$0xff]  ;;  %3270 = vst [vmem:[#allocation21_spill] sm:$0xff] %v2900_v43  ;;  %v2936_v20 = vld [vmem:[%s3203_s7 + $0x38] sm:$0xff] }
 0x270   : > { %v1952_v59 = vpop.eup %1951  ;;  %1963 = vtanh.f32 %v908_v8  ;;  %1100 = vmatpush.msrb.mxu1 %v1950_v54  ;;  %3269 = vst [vmem:[#allocation20_spill] sm:$0xff] %v2891_v52  ;;  %v2909_v8 = vld [vmem:[%s3203_s7 + $0x20] sm:$0xff] }
 0x271   : > { %v1954_v42 = vpop.eup %1953  ;;  %1965 = vtanh.f32 %v949_v21  ;;  %1060 = vmatpush.msrb.mxu0 %v1952_v59  ;;  %3271 = vst [vmem:[#allocation22_spill] sm:$0xff] %v2909_v8  ;;  %v2927_v21 = vld [vmem:[%s3203_s7 + $0x30] sm:$0xff] }
 0x272   : > { %v1956_v49 = vpop.eup %1955  ;;  %1967 = vtanh.f32 %v905_v40  ;;  %1101 = vmatpush.msrb.mxu1 %v1954_v42  ;;  %3272 = vst [vmem:[#allocation23_spill] sm:$0xff] %v2918_v60 }
 0x273   : > { %v1958_v37 = vpop.eup %1957  ;;  %1969 = vtanh.f32 %v946_v9  ;;  %1061 = vmatpush.msrb.mxu0 %v1956_v49  ;;  %3273 = vst [vmem:[#allocation24_spill] sm:$0xff] %v2927_v21 }
 0x274   : > { %v1960_v0 = vpop.eup %1959  ;;  %1102 = vmatpush.msrb.mxu1 %v1958_v37  ;;  %3274 = vst [vmem:[#allocation25_spill] sm:$0xff] %v2936_v20 }
 0x275   : > { %v1962_v28 = vpop.eup %1961  ;;  %1062 = vmatpush.msrb.mxu0 %v1960_v0 }
 0x276   : > { %v1964_v35 = vpop.eup %1963  ;;  %1103 = vmatpush.msrb.mxu1 %v1962_v28 }
 0x277   : > { %v1966_v27 = vpop.eup %1965  ;;  %1063 = vmatpush.msrb.mxu0 %v1964_v35 }
 0x278   : > { %v1968_v26 = vpop.eup %1967  ;;  %1104 = vmatpush.msrb.mxu1 %v1966_v27 }
 0x279   : > { %v1970_v30 = vpop.eup %1969  ;;  %1064 = vmatpush.msrb.mxu0 %v1968_v26 }
 0x27a   : > { %1105 = vmatpush.msrb.mxu1 %v1970_v30  ;;  %1751 = vmatmul.msk.f32.vlgmr.msrb.gmra.mxu0 %vm700_vm0, %v2873_v25  ;;  %v2942_v30 = vpop.permute.xlu0 %1022 }
 0x27b   : > { %1759 = vmatmul.msk.f32.vlgmr.msrb.gmra.mxu1 %vm700_vm0, %v2873_v25 }
 0x282   : > { %1752 = vmatmul.msk.f32.gmra.mxu0 %vm700_vm0, %v2882_v44 }
 0x283   : > { %1760 = vmatmul.msk.f32.gmra.mxu1 %vm700_vm0, %v2882_v44 }
 0x28a   : > { %1753 = vmatmul.msk.f32.gmra.mxu0 %vm700_vm0, %v2891_v52 }
 0x28b   : > { %1761 = vmatmul.msk.f32.gmra.mxu1 %vm700_vm0, %v2891_v52 }
 0x292   : > { %1754 = vmatmul.msk.f32.gmra.mxu0 %vm700_vm0, %v2900_v43 }
 0x293   : > { %1762 = vmatmul.msk.f32.gmra.mxu1 %vm700_vm0, %v2900_v43  ;;  %v2946_v43 = vpop.permute.xlu2 %1012 }
 0x29a   : > { %1755 = vmatmul.msk.f32.gmra.mxu0 %vm700_vm0, %v2909_v8 }
 0x29b   : > { %1763 = vmatmul.msk.f32.gmra.mxu1 %vm700_vm0, %v2909_v8  ;;  %v2961_v32 = vpop.permute.xlu2 %997 }
 0x2a2   : > { %1756 = vmatmul.msk.f32.gmra.mxu0 %vm700_vm0, %v2918_v60 }
 0x2a3   : > { %1764 = vmatmul.msk.f32.gmra.mxu1 %vm700_vm0, %v2918_v60 }
 0x2aa   : > { %1757 = vmatmul.msk.f32.gmra.mxu0 %vm700_vm0, %v2927_v21 }
 0x2ab   : > { %1765 = vmatmul.msk.f32.gmra.mxu1 %vm700_vm0, %v2927_v21  ;;  %v2944_v21 = vpop.permute.xlu1 %1017 }
 0x2b2   : > { %1758 = vmatmul.msk.f32.gmra.mxu0 %vm700_vm0, %v2936_v20 }
 0x2b3   : > { %1766 = vmatmul.msk.f32.gmra.mxu1 %vm700_vm0, %v2936_v20  ;;  %v2948_v20 = vpop.permute.xlu0 %1007  ;;  %v2952_v63 = vpop.permute.xlu1 %1002 }
 0x2f7   : > { %v1066_v40 = vpop.f32.mrf.mxu0 }
 0x2f8   : > { %v1107_v54 = vpop.f32.mrf.mxu1 }
 0x2ff   : > { %v1069_v9 = vpop.f32.mrf.mxu0 }
 0x300   : > { %v1110_v59 = vpop.f32.mrf.mxu1 }
 0x307   : > { %v1072_v42 = vpop.f32.mrf.mxu0 }
 0x308   : > { %v1113_v49 = vpop.f32.mrf.mxu1 }
 0x30f   : > { %v1075_v37 = vpop.f32.mrf.mxu0 }
 0x310   : > { %v1116_v0 = vpop.f32.mrf.mxu1 }
 0x317   : > { %v1078_v28 = vpop.f32.mrf.mxu0 }
 0x318   : > { %v1119_v35 = vpop.f32.mrf.mxu1  ;;  %v1079_v1 = vadd.f32 %v1078_v28, %v2948_v20  ;;  %v2969_v28 = vpop.permute.xlu1 %987 }
 0x31f   : > { %v1081_v27 = vpop.f32.mrf.mxu0 }
 0x320   : > { %v1122_v26 = vpop.f32.mrf.mxu1  ;;  %v1082_v29 = vadd.f32 %v1081_v27, %v2946_v43 }
 0x321   : > { %v1123_v38 = vadd.f32 %v1122_v26, %v2946_v43 }
 0x327   : > { %v1084_v60 = vpop.f32.mrf.mxu0 }
 0x328   : > { %v1125_v8 = vpop.f32.mrf.mxu1  ;;  %v1085_v44 = vadd.f32 %v1084_v60, %v2944_v21  ;;  %v1120_v60 = vadd.f32 %v1119_v35, %v2948_v20 }
 0x329   : > { %v1126_v58 = vadd.f32 %v1125_v8, %v2944_v21  ;;  %v1117_v8 = vadd.f32 %v1116_v0, %v2952_v63  ;;  %v1108_v0 = vadd.f32 %v1107_v54, %v2969_v28 }
 0x32f   : > { %v1087_v52 = vpop.f32.mrf.mxu0 }
 0x330   : > { %v1088_v25 = vadd.f32 %v1087_v52, %v2942_v30  ;;  %v1128_v14 = vpop.f32.mrf.mxu1  ;;  %v1076_v52 = vadd.f32 %v1075_v37, %v2952_v63 }
 0x331   : > { %v1129_v16 = vadd.f32 %v1128_v14, %v2942_v30 }
 0x332   : > { %1971 = vtanh.f32 %v1088_v25  ;;  %v1073_v25 = vadd.f32 %v1072_v42, %v2961_v32  ;;  %v1067_v42 = vadd.f32 %v1066_v40, %v2969_v28 }
 0x333   : > { %1973 = vtanh.f32 %v1129_v16  ;;  %v2965_v16 = vpop.permute.xlu0 %992 }
 0x334   : > { %1975 = vtanh.f32 %v1085_v44  ;;  %v1114_v44 = vadd.f32 %v1113_v49, %v2961_v32  ;;  %v1070_v37 = vadd.f32 %v1069_v9, %v2965_v16 }
 0x335   : > { %1977 = vtanh.f32 %v1126_v58 }
 0x336   : > { %1979 = vtanh.f32 %v1082_v29 }
 0x337   : > { %1981 = vtanh.f32 %v1123_v38  ;;  %v1111_v38 = vadd.f32 %v1110_v59, %v2965_v16 }
 0x338   : > { %v1972_v14 = vpop.eup %1971  ;;  %1983 = vtanh.f32 %v1079_v1 }
 0x339   : > { %v1974_v27 = vpop.eup %1973  ;;  %1985 = vtanh.f32 %v1120_v60  ;;  %1163 = vmatpush.msrb.mxu2 %v1972_v14 }
 0x33a   : > { %v1976_v58 = vpop.eup %1975  ;;  %1987 = vtanh.f32 %v1076_v52  ;;  %1183 = vmatpush.msrb.mxu3 %v1974_v27 }
 0x33b   : > { %v1978_v29 = vpop.eup %1977  ;;  %1989 = vtanh.f32 %v1117_v8  ;;  %1164 = vmatpush.msrb.mxu2 %v1976_v58  ;;  %v2981_v8 = vld [vmem:[%s3205_s9] sm:$0x3] }
 0x33c   : > { %v1980_v1 = vpop.eup %1979  ;;  %1991 = vtanh.f32 %v1073_v25  ;;  %1184 = vmatpush.msrb.mxu3 %v1978_v29 }
 0x33d   : > { %v1982_v49 = vpop.eup %1981  ;;  %1993 = vtanh.f32 %v1114_v44  ;;  %1165 = vmatpush.msrb.mxu2 %v1980_v1 }
 0x33e   : > { %v1984_v9 = vpop.eup %1983  ;;  %1995 = vtanh.f32 %v1070_v37  ;;  %1185 = vmatpush.msrb.mxu3 %v1982_v49 }
 0x33f   : > { %v1986_v35 = vpop.eup %1985  ;;  %1997 = vtanh.f32 %v1111_v38  ;;  %1166 = vmatpush.msrb.mxu2 %v1984_v9 }
 0x340   : > { %v1988_v26 = vpop.eup %1987  ;;  %1999 = vtanh.f32 %v1067_v42  ;;  %1186 = vmatpush.msrb.mxu3 %v1986_v35 }
 0x341   : > { %v1990_v59 = vpop.eup %1989  ;;  %2001 = vtanh.f32 %v1108_v0  ;;  %1167 = vmatpush.msrb.mxu2 %v1988_v26 }
 0x342   : > { %v1992_v40 = vpop.eup %1991  ;;  %2003 = vtanh.f32 %v2520_v46  ;;  %1187 = vmatpush.msrb.mxu3 %v1990_v59 }
 0x343   : > { %v1994_v60 = vpop.eup %1993  ;;  %2005 = vtanh.f32 %v2522_v47  ;;  %1168 = vmatpush.msrb.mxu2 %v1992_v40 }
 0x344   : > { %v1996_v54 = vpop.eup %1995  ;;  %2007 = vtanh.f32 %v2548_v10  ;;  %1188 = vmatpush.msrb.mxu3 %v1994_v60 }
 0x345   : > { %v1998_v52 = vpop.eup %1997  ;;  %2009 = vtanh.f32 %v2550_v11  ;;  %1169 = vmatpush.msrb.mxu2 %v1996_v54 }
 0x346   : > { %v2000_v14 = vpop.eup %1999  ;;  %2011 = vtanh.f32 %v2583_v36  ;;  %1189 = vmatpush.msrb.mxu3 %v1998_v52 }
 0x347   : > { %v2002_v46 = vpop.eup %2001  ;;  %2013 = vtanh.f32 %v2586_v3  ;;  %1170 = vmatpush.msrb.mxu2 %v2000_v14 }
 0x348   : > { %v2004_v47 = vpop.eup %2003  ;;  %2015 = vtanh.f32 %v2604_v5  ;;  %1190 = vmatpush.msrb.mxu3 %v2002_v46  ;;  %1767 = vmatmul.msk.f32.vlgmr.msrb.gmra.mxu2 %vm700_vm0, %v2981_v8 }
 0x349   : > { %v2006_v10 = vpop.eup %2005  ;;  %2017 = vtanh.f32 %v2606_v6  ;;  %1768 = vmatmul.msk.f32.vlgmr.msrb.gmra.mxu3 %vm700_vm0, %v2981_v8  ;;  %1304 = vmatpush.msra.mxu2 %v2004_v47 }
 0x34a   : > { %v2008_v11 = vpop.eup %2007  ;;  %2019 = vtanh.f32 %v2626_v45  ;;  %1345 = vmatpush.msra.mxu3 %v2006_v10 }
 0x34b   : > { %v2010_v36 = vpop.eup %2009  ;;  %2021 = vtanh.f32 %v2632_v31  ;;  %1305 = vmatpush.msra.mxu2 %v2008_v11 }
 0x34c   : > { %v2012_v3 = vpop.eup %2011  ;;  %2023 = vtanh.f32 %v2653_v18  ;;  %1346 = vmatpush.msra.mxu3 %v2010_v36 }
 0x34d   : > { %v2014_v5 = vpop.eup %2013  ;;  %2025 = vtanh.f32 %v2656_v22  ;;  %1306 = vmatpush.msra.mxu2 %v2012_v3 }
 0x34e   : > { %v2016_v6 = vpop.eup %2015  ;;  %2027 = vtanh.f32 %v2614_v12  ;;  %1347 = vmatpush.msra.mxu3 %v2014_v5 }
 0x34f   : > { %v2018_v25 = vpop.eup %2017  ;;  %2029 = vtanh.f32 %v2616_v61  ;;  %1307 = vmatpush.msra.mxu2 %v2016_v6 }
 0x350   : > { %v2020_v45 = vpop.eup %2019  ;;  %2031 = vtanh.f32 %v2658_v53  ;;  %1348 = vmatpush.msra.mxu3 %v2018_v25  ;;  %v3032_v53 = vpop.permute.xlu2 %1149 }
 0x351   : > { %v2022_v31 = vpop.eup %2021  ;;  %2033 = vtanh.f32 %v2660_v7  ;;  %1308 = vmatpush.msra.mxu2 %v2020_v45 }
 0x352   : > { %v2024_v18 = vpop.eup %2023  ;;  %1349 = vmatpush.msra.mxu3 %v2022_v31 }
 0x353   : > { %v2026_v22 = vpop.eup %2025  ;;  %1309 = vmatpush.msra.mxu2 %v2024_v18 }
 0x354   : > { %v2028_v27 = vpop.eup %2027  ;;  %1350 = vmatpush.msra.mxu3 %v2026_v22 }
 0x355   : > { %v2030_v12 = vpop.eup %2029  ;;  %1310 = vmatpush.msra.mxu2 %v2028_v27 }
 0x356   : > { %v2032_v44 = vpop.eup %2031  ;;  %1351 = vmatpush.msra.mxu3 %v2030_v12 }
 0x357   : > { %v2034_v61 = vpop.eup %2033  ;;  %1311 = vmatpush.msra.mxu2 %v2032_v44 }
 0x358   : > { %1352 = vmatpush.msra.mxu3 %v2034_v61  ;;  %1769 = vmatmul.msk.f32.vlgmr.msra.gmra.mxu2 %vm700_vm0, %v2665_v55 }
 0x359   : > { %1777 = vmatmul.msk.f32.vlgmr.msra.gmra.mxu3 %vm700_vm0, %v2665_v55 }
 0x360   : > { %1770 = vmatmul.msk.f32.gmra.mxu2 %vm700_vm0, %v2674_v56 }
 0x361   : > { %1778 = vmatmul.msk.f32.gmra.mxu3 %vm700_vm0, %v2674_v56 }
 0x368   : > { %1771 = vmatmul.msk.f32.gmra.mxu2 %vm700_vm0, %v2683_v62 }
 0x369   : > { %1779 = vmatmul.msk.f32.gmra.mxu3 %vm700_vm0, %v2683_v62 }
 0x370   : > { %1772 = vmatmul.msk.f32.gmra.mxu2 %vm700_vm0, %v2692_v13 }
 0x371   : > { %1780 = vmatmul.msk.f32.gmra.mxu3 %vm700_vm0, %v2692_v13 }
 0x378   : > { %1773 = vmatmul.msk.f32.gmra.mxu2 %vm700_vm0, %v2701_v17 }
 0x379   : > { %1781 = vmatmul.msk.f32.gmra.mxu3 %vm700_vm0, %v2701_v17 }
 0x380   : > { %1774 = vmatmul.msk.f32.gmra.mxu2 %vm700_vm0, %v2710_v23 }
 0x381   : > { %1782 = vmatmul.msk.f32.gmra.mxu3 %vm700_vm0, %v2710_v23 }
 0x388   : > { %1775 = vmatmul.msk.f32.gmra.mxu2 %vm700_vm0, %v2719_v4 }
 0x389   : > { %1783 = vmatmul.msk.f32.gmra.mxu3 %vm700_vm0, %v2719_v4 }
 0x390   : > { %1776 = vmatmul.msk.f32.gmra.mxu2 %vm700_vm0, %v2728_v24 }
 0x391   : > { %1784 = vmatmul.msk.f32.gmra.mxu3 %vm700_vm0, %v2728_v24 }
 0x3cb   : > { %v1172_v7 = vpop.f32.mrf.mxu2 }
 0x3cc   : > { %v1192_v55 = vpop.f32.mrf.mxu3  ;;  %v1173_v62 = vadd.f32 %v1172_v7, %v3032_v53 }
 0x3cd   : > { %v1193_v56 = vadd.f32 %v1192_v55, %v3032_v53 }
 0x3cf   : > { %v1197_v13 = vrot.slane %v1193_v56, 6 }
 0x3d1   : > { %v1199_v17 = vsel %vm1198_vm1, %v1173_v62, %v1197_v13  ;;  %v3275_v62 = vld [vmem:[#allocation5_spill] sm:$0xff]  ;;  %v3276_v13 = vld [vmem:[#allocation6_spill] sm:$0xff] }
 0x3d2   : > { %1201 = vst [vmem:[%s3039_s13] sm:$0xf] %v1199_v17 }
 0x3db   : > { %v1313_v23 = vpop.f32.mrf.mxu2 }
 0x3dc   : > { %v1354_v4 = vpop.f32.mrf.mxu3  ;;  %v1314_v31 = vadd.f32 %v1313_v23, %v2761_v2 }
 0x3e3   : > { %v1316_v24 = vpop.f32.mrf.mxu2 }
 0x3e4   : > { %v1357_v58 = vpop.f32.mrf.mxu3  ;;  %v1317_v25 = vadd.f32 %v1316_v24, %v2757_v41 }
 0x3e5   : > { %v1358_v45 = vadd.f32 %v1357_v58, %v2757_v41 }
 0x3eb   : > { %v1319_v37 = vpop.f32.mrf.mxu2 }
 0x3ec   : > { %v1360_v29 = vpop.f32.mrf.mxu3 }
 0x3f3   : > { %v1322_v38 = vpop.f32.mrf.mxu2 }
 0x3f4   : > { %v1363_v1 = vpop.f32.mrf.mxu3  ;;  %v1323_v36 = vadd.f32 %v1322_v38, %v2744_v57 }
 0x3f5   : > { %v1364_v3 = vadd.f32 %v1363_v1, %v2744_v57 }
 0x3fb   : > { %v1325_v42 = vpop.f32.mrf.mxu2 }
 0x3fc   : > { %v1366_v49 = vpop.f32.mrf.mxu3  ;;  %v1326_v10 = vadd.f32 %v1325_v42, %v2740_v50 }
 0x3fd   : > { %v1367_v11 = vadd.f32 %v1366_v49, %v2740_v50 }
 0x403   : > { %v1328_v0 = vpop.f32.mrf.mxu2 }
 0x404   : > { %v1369_v9 = vpop.f32.mrf.mxu3  ;;  %v1329_v46 = vadd.f32 %v1328_v0, %v2738_v34 }
 0x405   : > { %v1370_v47 = vadd.f32 %v1369_v9, %v2738_v34  ;;  %v1361_v34 = vadd.f32 %v1360_v29, %v2753_v19 }
 0x40b   : > { %v1331_v35 = vpop.f32.mrf.mxu2 }
 0x40c   : > { %v1372_v26 = vpop.f32.mrf.mxu3  ;;  %v1332_v40 = vadd.f32 %v1331_v35, %v2736_v33 }
 0x40d   : > { %v1373_v52 = vadd.f32 %v1372_v26, %v2736_v33 }
 0x413   : > { %v1334_v59 = vpop.f32.mrf.mxu2 }
 0x414   : > { %v1335_v60 = vadd.f32 %v1334_v59, %v2734_v39  ;;  %v1375_v54 = vpop.f32.mrf.mxu3  ;;  %v3280_v59 = vld [vmem:[#allocation11_spill] sm:$0xff] }
 0x415   : > { %v1376_v14 = vadd.f32 %v1375_v54, %v2734_v39  ;;  %v1320_v39 = vadd.f32 %v1319_v37, %v2753_v19  ;;  %v1355_v19 = vadd.f32 %v1354_v4, %v2761_v2 }
 0x416   : > { %2035 = vtanh.f32 %v1335_v60  ;;  %v3281_v60 = vld [vmem:[#allocation10_spill] sm:$0xff] }
 0x417   : > { %2037 = vtanh.f32 %v1376_v14 }
 0x418   : > { %2039 = vtanh.f32 %v1332_v40 }
 0x419   : > { %2041 = vtanh.f32 %v1373_v52 }
 0x41a   : > { %2043 = vtanh.f32 %v1329_v46 }
 0x41b   : > { %2045 = vtanh.f32 %v1370_v47  ;;  %v3282_v47 = vld [vmem:[#allocation12_spill] sm:$0xff] }
 0x41c   : > { %v2036_v33 = vpop.eup %2035  ;;  %2047 = vtanh.f32 %v1326_v10 }
 0x41d   : > { %v2038_v5 = vpop.eup %2037  ;;  %2049 = vtanh.f32 %v1367_v11  ;;  %1402 = vmatpush.msra.mxu0 %v2036_v33 }
 0x41e   : > { %v2040_v6 = vpop.eup %2039  ;;  %2051 = vtanh.f32 %v1323_v36  ;;  %1443 = vmatpush.msra.mxu1 %v2038_v5  ;;  %v3283_v36 = vld [vmem:[#allocation13_spill] sm:$0xff] }
 0x41f   : > { %v2042_v50 = vpop.eup %2041  ;;  %2053 = vtanh.f32 %v1364_v3  ;;  %1403 = vmatpush.msra.mxu0 %v2040_v6 }
 0x420   : > { %v2044_v57 = vpop.eup %2043  ;;  %2055 = vtanh.f32 %v1320_v39  ;;  %1444 = vmatpush.msra.mxu1 %v2042_v50  ;;  %v3284_v39 = vld [vmem:[#allocation14_spill] sm:$0xff] }
 0x421   : > { %v2046_v18 = vpop.eup %2045  ;;  %2057 = vtanh.f32 %v1361_v34  ;;  %1404 = vmatpush.msra.mxu0 %v2044_v57 }
 0x422   : > { %v2048_v22 = vpop.eup %2047  ;;  %2059 = vtanh.f32 %v1317_v25  ;;  %1445 = vmatpush.msra.mxu1 %v2046_v18  ;;  %v3285_v25 = vld [vmem:[#allocation15_spill] sm:$0xff]  ;;  %v3286_v18 = vld [vmem:[#allocation16_spill] sm:$0xff] }
 0x423   : > { %v2050_v27 = vpop.eup %2049  ;;  %2061 = vtanh.f32 %v1358_v45  ;;  %1405 = vmatpush.msra.mxu0 %v2048_v22 }
 0x424   : > { %v2052_v12 = vpop.eup %2051  ;;  %2063 = vtanh.f32 %v1314_v31  ;;  %1446 = vmatpush.msra.mxu1 %v2050_v27 }
 0x425   : > { %v2054_v41 = vpop.eup %2053  ;;  %2065 = vtanh.f32 %v1355_v19  ;;  %1406 = vmatpush.msra.mxu0 %v2052_v12 }
 0x426   : > { %v2056_v44 = vpop.eup %2055  ;;  %1447 = vmatpush.msra.mxu1 %v2054_v41  ;;  %v3287_v41 = vld [vmem:[#allocation17_spill] sm:$0xff] }
 0x427   : > { %v2058_v61 = vpop.eup %2057  ;;  %1407 = vmatpush.msra.mxu0 %v2056_v44 }
 0x428   : > { %v2060_v7 = vpop.eup %2059  ;;  %1448 = vmatpush.msra.mxu1 %v2058_v61 }
 0x429   : > { %v2062_v2 = vpop.eup %2061  ;;  %1408 = vmatpush.msra.mxu0 %v2060_v7 }
 0x42a   : > { %v2064_v55 = vpop.eup %2063  ;;  %1449 = vmatpush.msra.mxu1 %v2062_v2 }
 0x42b   : > { %v2066_v56 = vpop.eup %2065  ;;  %1409 = vmatpush.msra.mxu0 %v2064_v55 }
 0x42c   : > { %1450 = vmatpush.msra.mxu1 %v2066_v56  ;;  %1785 = vmatmul.msk.f32.vlgmr.msra.gmra.mxu0 %vm700_vm0, %v2769_v51 }
 0x42d   : > { %1793 = vmatmul.msk.f32.vlgmr.msra.gmra.mxu1 %vm700_vm0, %v2769_v51  ;;  %v3277_v51 = vld [vmem:[#allocation7_spill] sm:$0xff] }
 0x434   : > { %1786 = vmatmul.msk.f32.gmra.mxu0 %vm700_vm0, %v2778_v48 }
 0x435   : > { %1794 = vmatmul.msk.f32.gmra.mxu1 %vm700_vm0, %v2778_v48  ;;  %v3278_v48 = vld [vmem:[#allocation8_spill] sm:$0xff] }
 0x43c   : > { %1787 = vmatmul.msk.f32.gmra.mxu0 %vm700_vm0, %v2787_v15 }
 0x43d   : > { %1795 = vmatmul.msk.f32.gmra.mxu1 %vm700_vm0, %v2787_v15  ;;  %v3279_v15 = vld [vmem:[#allocation9_spill] sm:$0xff] }
 0x444   : > { %1788 = vmatmul.msk.f32.gmra.mxu0 %vm700_vm0, %v3275_v62 }
 0x445   : > { %1796 = vmatmul.msk.f32.gmra.mxu1 %vm700_vm0, %v3275_v62 }
 0x44c   : > { %1789 = vmatmul.msk.f32.gmra.mxu0 %vm700_vm0, %v3276_v13 }
 0x44d   : > { %1797 = vmatmul.msk.f32.gmra.mxu1 %vm700_vm0, %v3276_v13 }
 0x454   : > { %1790 = vmatmul.msk.f32.gmra.mxu0 %vm700_vm0, %v3277_v51 }
 0x455   : > { %1798 = vmatmul.msk.f32.gmra.mxu1 %vm700_vm0, %v3277_v51 }
 0x45c   : > { %1791 = vmatmul.msk.f32.gmra.mxu0 %vm700_vm0, %v3278_v48 }
 0x45d   : > { %1799 = vmatmul.msk.f32.gmra.mxu1 %vm700_vm0, %v3278_v48 }
 0x464   : > { %1792 = vmatmul.msk.f32.gmra.mxu0 %vm700_vm0, %v3279_v15 }
 0x465   : > { %1800 = vmatmul.msk.f32.gmra.mxu1 %vm700_vm0, %v3279_v15 }
 0x4a9   : > { %v1411_v17 = vpop.f32.mrf.mxu0 }
 0x4aa   : > { %v1452_v23 = vpop.f32.mrf.mxu1  ;;  %v1412_v44 = vadd.f32 %v1411_v17, %v3287_v41 }
 0x4ab   : > { %v1453_v7 = vadd.f32 %v1452_v23, %v3287_v41 }
 0x4b1   : > { %v1414_v4 = vpop.f32.mrf.mxu0 }
 0x4b2   : > { %v1455_v24 = vpop.f32.mrf.mxu1  ;;  %v1415_v19 = vadd.f32 %v1414_v4, %v3286_v18  ;;  %v3288_v4 = vld [vmem:[#allocation18_spill] sm:$0xff] }
 0x4b3   : > { %v1456_v27 = vadd.f32 %v1455_v24, %v3286_v18  ;;  %v3289_v24 = vld [vmem:[#allocation19_spill] sm:$0xff] }
 0x4b9   : > { %v1417_v58 = vpop.f32.mrf.mxu0 }
 0x4ba   : > { %v1458_v37 = vpop.f32.mrf.mxu1  ;;  %v1418_v50 = vadd.f32 %v1417_v58, %v3285_v25  ;;  %v3290_v58 = vld [vmem:[#allocation20_spill] sm:$0xff] }
 0x4bb   : > { %v1459_v57 = vadd.f32 %v1458_v37, %v3285_v25  ;;  %v3291_v37 = vld [vmem:[#allocation21_spill] sm:$0xff] }
 0x4c1   : > { %v1420_v29 = vpop.f32.mrf.mxu0 }
 0x4c2   : > { %v1461_v38 = vpop.f32.mrf.mxu1  ;;  %v1421_v5 = vadd.f32 %v1420_v29, %v3284_v39  ;;  %v3292_v29 = vld [vmem:[#allocation22_spill] sm:$0xff] }
 0x4c3   : > { %v1462_v34 = vadd.f32 %v1461_v38, %v3284_v39  ;;  %v3293_v38 = vld [vmem:[#allocation23_spill] sm:$0xff] }
 0x4c9   : > { %v1423_v1 = vpop.f32.mrf.mxu0 }
 0x4ca   : > { %v1464_v42 = vpop.f32.mrf.mxu1  ;;  %v1424_v3 = vadd.f32 %v1423_v1, %v3283_v36  ;;  %v3294_v1 = vld [vmem:[#allocation24_spill] sm:$0xff] }
 0x4cb   : > { %v1465_v33 = vadd.f32 %v1464_v42, %v3283_v36  ;;  %v3295_v42 = vld [vmem:[#allocation25_spill] sm:$0xff] }
 0x4d1   : > { %v1426_v49 = vpop.f32.mrf.mxu0 }
 0x4d2   : > { %v1467_v0 = vpop.f32.mrf.mxu1  ;;  %v1427_v10 = vadd.f32 %v1426_v49, %v3282_v47 }
 0x4d3   : > { %v1468_v11 = vadd.f32 %v1467_v0, %v3282_v47 }
 0x4d9   : > { %v1429_v9 = vpop.f32.mrf.mxu0 }
 0x4da   : > { %v1470_v35 = vpop.f32.mrf.mxu1  ;;  %v1430_v40 = vadd.f32 %v1429_v9, %v3280_v59 }
 0x4db   : > { %v1471_v14 = vadd.f32 %v1470_v35, %v3280_v59 }
 0x4e1   : > { %v1432_v26 = vpop.f32.mrf.mxu0 }
 0x4e2   : > { %v1433_v54 = vadd.f32 %v1432_v26, %v3281_v60  ;;  %v1473_v52 = vpop.f32.mrf.mxu1 }
 0x4e3   : > { %v1474_v46 = vadd.f32 %v1473_v52, %v3281_v60 }
 0x4e4   : > { %2067 = vtanh.f32 %v1433_v54 }
 0x4e5   : > { %2069 = vtanh.f32 %v1474_v46 }
 0x4e6   : > { %2071 = vtanh.f32 %v1430_v40 }
 0x4e7   : > { %2073 = vtanh.f32 %v1471_v14 }
 0x4e8   : > { %2075 = vtanh.f32 %v1427_v10 }
 0x4e9   : > { %2077 = vtanh.f32 %v1468_v11 }
 0x4ea   : > { %v2068_v6 = vpop.eup %2067  ;;  %2079 = vtanh.f32 %v1424_v3 }
 0x4eb   : > { %v2070_v45 = vpop.eup %2069  ;;  %2081 = vtanh.f32 %v1465_v33  ;;  %1500 = vmatpush.msrb.mxu2 %v2068_v6 }
 0x4ec   : > { %v2072_v31 = vpop.eup %2071  ;;  %2083 = vtanh.f32 %v1421_v5  ;;  %1541 = vmatpush.msrb.mxu3 %v2070_v45 }
 0x4ed   : > { %v2074_v22 = vpop.eup %2073  ;;  %2085 = vtanh.f32 %v1462_v34  ;;  %1501 = vmatpush.msrb.mxu2 %v2072_v31 }
 0x4ee   : > { %v2076_v12 = vpop.eup %2075  ;;  %2087 = vtanh.f32 %v1418_v50  ;;  %1542 = vmatpush.msrb.mxu3 %v2074_v22 }
 0x4ef   : > { %v2078_v61 = vpop.eup %2077  ;;  %2089 = vtanh.f32 %v1459_v57  ;;  %1502 = vmatpush.msrb.mxu2 %v2076_v12 }
 0x4f0   : > { %v2080_v2 = vpop.eup %2079  ;;  %2091 = vtanh.f32 %v1415_v19  ;;  %1543 = vmatpush.msrb.mxu3 %v2078_v61 }
 0x4f1   : > { %v2082_v55 = vpop.eup %2081  ;;  %2093 = vtanh.f32 %v1456_v27  ;;  %1503 = vmatpush.msrb.mxu2 %v2080_v2 }
 0x4f2   : > { %v2084_v56 = vpop.eup %2083  ;;  %2095 = vtanh.f32 %v1412_v44  ;;  %1544 = vmatpush.msrb.mxu3 %v2082_v55 }
 0x4f3   : > { %v2086_v62 = vpop.eup %2085  ;;  %2097 = vtanh.f32 %v1453_v7  ;;  %1504 = vmatpush.msrb.mxu2 %v2084_v56 }
 0x4f4   : > { %v2088_v13 = vpop.eup %2087  ;;  %1545 = vmatpush.msrb.mxu3 %v2086_v62 }
 0x4f5   : > { %v2090_v51 = vpop.eup %2089  ;;  %1505 = vmatpush.msrb.mxu2 %v2088_v13 }
 0x4f6   : > { %v2092_v48 = vpop.eup %2091  ;;  %1546 = vmatpush.msrb.mxu3 %v2090_v51 }
 0x4f7   : > { %v2094_v15 = vpop.eup %2093  ;;  %1506 = vmatpush.msrb.mxu2 %v2092_v48 }
 0x4f8   : > { %v2096_v17 = vpop.eup %2095  ;;  %1547 = vmatpush.msrb.mxu3 %v2094_v15 }
 0x4f9   : > { %v2098_v23 = vpop.eup %2097  ;;  %1507 = vmatpush.msrb.mxu2 %v2096_v17 }
 0x4fa   : > { %1548 = vmatpush.msrb.mxu3 %v2098_v23  ;;  %1801 = vmatmul.msk.f32.vlgmr.msrb.gmra.mxu2 %vm700_vm0, %v3288_v4 }
 0x4fb   : > { %1809 = vmatmul.msk.f32.vlgmr.msrb.gmra.mxu3 %vm700_vm0, %v3288_v4 }
 0x502   : > { %1802 = vmatmul.msk.f32.gmra.mxu2 %vm700_vm0, %v3289_v24 }
 0x503   : > { %1810 = vmatmul.msk.f32.gmra.mxu3 %vm700_vm0, %v3289_v24 }
 0x50a   : > { %1803 = vmatmul.msk.f32.gmra.mxu2 %vm700_vm0, %v3290_v58 }
 0x50b   : > { %1811 = vmatmul.msk.f32.gmra.mxu3 %vm700_vm0, %v3290_v58 }
 0x512   : > { %1804 = vmatmul.msk.f32.gmra.mxu2 %vm700_vm0, %v3291_v37 }
 0x513   : > { %1812 = vmatmul.msk.f32.gmra.mxu3 %vm700_vm0, %v3291_v37 }
 0x51a   : > { %1805 = vmatmul.msk.f32.gmra.mxu2 %vm700_vm0, %v3292_v29 }
 0x51b   : > { %1813 = vmatmul.msk.f32.gmra.mxu3 %vm700_vm0, %v3292_v29 }
 0x522   : > { %1806 = vmatmul.msk.f32.gmra.mxu2 %vm700_vm0, %v3293_v38 }
 0x523   : > { %1814 = vmatmul.msk.f32.gmra.mxu3 %vm700_vm0, %v3293_v38 }
 0x52a   : > { %1807 = vmatmul.msk.f32.gmra.mxu2 %vm700_vm0, %v3294_v1 }
 0x52b   : > { %1815 = vmatmul.msk.f32.gmra.mxu3 %vm700_vm0, %v3294_v1 }
 0x532   : > { %1808 = vmatmul.msk.f32.gmra.mxu2 %vm700_vm0, %v3295_v42 }
 0x533   : > { %1816 = vmatmul.msk.f32.gmra.mxu3 %vm700_vm0, %v3295_v42 }
 0x57d   : > { %v1509_v49 = vpop.f32.mrf.mxu2 }
 0x57e   : > { %v1550_v0 = vpop.f32.mrf.mxu3  ;;  %v1510_v27 = vadd.f32 %v1509_v49, %v2969_v28 }
 0x585   : > { %v1512_v9 = vpop.f32.mrf.mxu2 }
 0x586   : > { %v1553_v35 = vpop.f32.mrf.mxu3  ;;  %v1513_v19 = vadd.f32 %v1512_v9, %v2965_v16 }
 0x587   : > { %v1554_v22 = vadd.f32 %v1553_v35, %v2965_v16 }
 0x58d   : > { %v1515_v26 = vpop.f32.mrf.mxu2 }
 0x58e   : > { %v1556_v59 = vpop.f32.mrf.mxu3 }
 0x595   : > { %v1518_v40 = vpop.f32.mrf.mxu2 }
 0x596   : > { %v1559_v60 = vpop.f32.mrf.mxu3  ;;  %v1519_v45 = vadd.f32 %v1518_v40, %v2952_v63 }
 0x597   : > { %v1560_v57 = vadd.f32 %v1559_v60, %v2952_v63 }
 0x59d   : > { %v1521_v54 = vpop.f32.mrf.mxu2 }
 0x59e   : > { %v1562_v52 = vpop.f32.mrf.mxu3  ;;  %v1522_v25 = vadd.f32 %v1521_v54, %v2948_v20 }
 0x59f   : > { %v1563_v50 = vadd.f32 %v1562_v52, %v2948_v20 }
 0x5a5   : > { %v1524_v14 = vpop.f32.mrf.mxu2 }
 0x5a6   : > { %v1565_v46 = vpop.f32.mrf.mxu3  ;;  %v1525_v34 = vadd.f32 %v1524_v14, %v2946_v43 }
 0x5a7   : > { %v1566_v6 = vadd.f32 %v1565_v46, %v2946_v43  ;;  %v1557_v43 = vadd.f32 %v1556_v59, %v2961_v32 }
 0x5ad   : > { %v1527_v47 = vpop.f32.mrf.mxu2 }
 0x5ae   : > { %v1568_v10 = vpop.f32.mrf.mxu3  ;;  %v1528_v36 = vadd.f32 %v1527_v47, %v2944_v21 }
 0x5af   : > { %v1569_v39 = vadd.f32 %v1568_v10, %v2944_v21 }
 0x5b5   : > { %v1530_v11 = vpop.f32.mrf.mxu2 }
 0x5b6   : > { %v1531_v3 = vadd.f32 %v1530_v11, %v2942_v30  ;;  %v1571_v33 = vpop.f32.mrf.mxu3 }
 0x5b7   : > { %v1572_v5 = vadd.f32 %v1571_v33, %v2942_v30  ;;  %v1516_v30 = vadd.f32 %v1515_v26, %v2961_v32  ;;  %v1551_v32 = vadd.f32 %v1550_v0, %v2969_v28 }
 0x5b8   : > { %2099 = vtanh.f32 %v1531_v3 }
 0x5b9   : > { %2101 = vtanh.f32 %v1572_v5 }
 0x5ba   : > { %2103 = vtanh.f32 %v1528_v36 }
 0x5bb   : > { %2105 = vtanh.f32 %v1569_v39 }
 0x5bc   : > { %2107 = vtanh.f32 %v1525_v34 }
 0x5bd   : > { %2109 = vtanh.f32 %v1566_v6 }
 0x5be   : > { %v2100_v21 = vpop.eup %2099  ;;  %2111 = vtanh.f32 %v1522_v25 }
 0x5bf   : > { %v2102_v31 = vpop.eup %2101  ;;  %2113 = vtanh.f32 %v1563_v50  ;;  %1598 = vmatpush.msrb.mxu0 %v2100_v21 }
 0x5c0   : > { %v2104_v18 = vpop.eup %2103  ;;  %2115 = vtanh.f32 %v1519_v45  ;;  %1618 = vmatpush.msrb.mxu1 %v2102_v31 }
 0x5c1   : > { %v2106_v20 = vpop.eup %2105  ;;  %2117 = vtanh.f32 %v1560_v57  ;;  %1599 = vmatpush.msrb.mxu0 %v2104_v18 }
 0x5c2   : > { %v2108_v63 = vpop.eup %2107  ;;  %2119 = vtanh.f32 %v1516_v30  ;;  %1619 = vmatpush.msrb.mxu1 %v2106_v20 }
 0x5c3   : > { %v2110_v12 = vpop.eup %2109  ;;  %2121 = vtanh.f32 %v1557_v43  ;;  %1600 = vmatpush.msrb.mxu0 %v2108_v63 }
 0x5c4   : > { %v2112_v41 = vpop.eup %2111  ;;  %2123 = vtanh.f32 %v1513_v19  ;;  %1620 = vmatpush.msrb.mxu1 %v2110_v12 }
 0x5c5   : > { %v2114_v44 = vpop.eup %2113  ;;  %2125 = vtanh.f32 %v1554_v22  ;;  %1601 = vmatpush.msrb.mxu0 %v2112_v41 }
 0x5c6   : > { %v2116_v61 = vpop.eup %2115  ;;  %2127 = vtanh.f32 %v1510_v27  ;;  %1621 = vmatpush.msrb.mxu1 %v2114_v44 }
 0x5c7   : > { %v2118_v16 = vpop.eup %2117  ;;  %2129 = vtanh.f32 %v1551_v32  ;;  %1602 = vmatpush.msrb.mxu0 %v2116_v61 }
 0x5c8   : > { %v2120_v7 = vpop.eup %2119  ;;  %1622 = vmatpush.msrb.mxu1 %v2118_v16 }
 0x5c9   : > { %v2122_v2 = vpop.eup %2121  ;;  %1603 = vmatpush.msrb.mxu0 %v2120_v7 }
 0x5ca   : > { %v2124_v28 = vpop.eup %2123  ;;  %1623 = vmatpush.msrb.mxu1 %v2122_v2 }
 0x5cb   : > { %v2126_v55 = vpop.eup %2125  ;;  %1604 = vmatpush.msrb.mxu0 %v2124_v28 }
 0x5cc   : > { %v2128_v56 = vpop.eup %2127  ;;  %1624 = vmatpush.msrb.mxu1 %v2126_v55 }
 0x5cd   : > { %v2130_v62 = vpop.eup %2129  ;;  %1605 = vmatpush.msrb.mxu0 %v2128_v56 }
 0x5ce   : > { %1625 = vmatpush.msrb.mxu1 %v2130_v62  ;;  %1817 = vmatmul.msk.f32.vlgmr.msrb.gmra.mxu0 %vm700_vm0, %v2981_v8 }
 0x5cf   : > { %1818 = vmatmul.msk.f32.vlgmr.msrb.gmra.mxu1 %vm700_vm0, %v2981_v8 }
 0x64b   : > { %v1607_v13 = vpop.f32.mrf.mxu0 }
 0x64c   : > { %v1627_v51 = vpop.f32.mrf.mxu1  ;;  %v1608_v15 = vadd.f32 %v1607_v13, %v3032_v53 }
 0x64d   : > { %v1628_v48 = vadd.f32 %v1627_v51, %v3032_v53 }
 0x64f   : > { %v1632_v17 = vrot.slane %v1628_v48, 6 }
 0x651   : > { %v1633_v23 = vsel %vm1198_vm1, %v1608_v15, %v1632_v17 }
 0x652   : > { %1635 = vst [vmem:[%s3039_s13 + $0x4] sm:$0xf] %v1633_v23 }
 0x653   : > { %2158 = shalt.err (!%p2155_p3)
}
 0x654   : > { %1825 = dma.vmem_to_hbm [thread:$0]  (%p2295_p5), %s1651_s22, 128, %s1653_s15, %s1637_s21  }
 0x655 PF: > { %p1831_p4 = scmp.ge.s32.totalorder %s2193_s20, 2  ;;  %s1664_s30 = sand.u32 1, %s2181_s17  }
 0x656   : > { %s1665_s13 = scalar_lea.sflag [#allocation3], %s1664_s30 }
 0x657   : > { %p1828_p7 = pnand %p1831_p4, %p2299_p6 }
 0x659   : > { %p1829_p8 = pneg %p1828_p7 }
 0x65b   : > { %2176 = dma.done.wait (%p1829_p8), %s1665_s13, 128  }
 0x65c   : > { %2178 = vsyncadd (%p1829_p8), %s1665_s13, 4294967168  ;;  %p21_p9 = scmp.ge.s32.totalorder %s2282_s23, 4   ;;  %s3296_s17 = smov %s2185_s18 }
 0x65d   : > { %s3297_s18 = smov %s2189_s19  ;;  %s3298_s19 = smov %s2293_s26 }
 0x65e   : > { %s3299_s20 = smov %s2282_s23  ;;  %23 = sbr.rel (!%p21_p9) target bundleno = 5 (0x5), region = 99 }
 0x663   :  { %1671 = vsyncpa [#allocation3], 1 }
 0x664   :  { %1673 = vsyncpa [#allocation3 + $0x1], 1 }

</bundles_post_ra>
